<compile_context>
chip_gen: v6e
topology: v6e:2x2x1
jax: 0.10.0
libtpu: 0.0.40
codegen_flags: <defaults>
</compile_context>

<pallas_src>
import functools

import jax
import jax.numpy as jnp
from jax.experimental import pallas as pl
from jax.experimental.pallas import tpu as pltpu

EMBED_SIZE = 256   # matches the module's global `embed_size`
BLOCK_SIZE = 64    # matches the module's global `block_size` (max causal window)


def mha_kernel(x_ref, wqkv_ref, wp_ref, bp_ref, mask_ref, o_ref,
               *, num_heads, head_size):
    BT, T, C = x_ref.shape           # block of BT batch elements
    M = BT * T

    # One wide, lane-dense projection for every head's K, Q, V at once.
    # x is already bf16 (cast in the wrapper); Wq already carries the C**-0.5 scale.
    x2d = x_ref[...].reshape(M, C)
    qkv = jnp.dot(x2d, wqkv_ref[...], preferred_element_type=jnp.float32)   # (M, 3C) f32
    qkv_bf = qkv.astype(jnp.bfloat16)   # bf16 MXU inputs for the attention core

    add_mask = mask_ref[...]            # (T, T) f32 additive causal mask (0 / -1e30)

    k_all = qkv_bf[:, 0 * C:1 * C].reshape(BT, T, C)
    q_all = qkv_bf[:, 1 * C:2 * C].reshape(BT, T, C)
    v_all = qkv_bf[:, 2 * C:3 * C].reshape(BT, T, C)

    # Per-head attention core (static, small loop). Head outputs are staged in bf16
    # and concatenated so the output projection is a single K=256 MXU matmul.
    head_outs = []
    for h in range(num_heads):
        lo = h * head_size
        hi = lo + head_size
        k = k_all[:, :, lo:hi]                       # (BT, T, hs) bf16
        q = q_all[:, :, lo:hi]
        v = v_all[:, :, lo:hi]

        # Reference computes k @ q^T (not q @ k^T); scale already folded into Wq.
        s = jnp.einsum("bth,bsh->bts", k, q,
                       preferred_element_type=jnp.float32)                  # (BT, T, T) f32
        s = s + add_mask
        s = s - jnp.max(s, axis=-1, keepdims=True)
        p = jnp.exp(s)
        p = p * pl.reciprocal(jnp.sum(p, axis=-1, keepdims=True), approx=True)

        head_out = jnp.einsum("bts,bsh->bth", p.astype(jnp.bfloat16), v,
                              preferred_element_type=jnp.float32)           # (BT, T, hs) f32
        head_outs.append(head_out.astype(jnp.bfloat16))

    cat = jnp.concatenate(head_outs, axis=-1).reshape(M, C)                 # (M, C) bf16

    # Single lane-dense output projection (K = C = 256) + bias, f32 accumulation.
    out = jnp.dot(cat, wp_ref[...], preferred_element_type=jnp.float32)     # (M, C) f32
    o_ref[...] = (out + bp_ref[...]).reshape(BT, T, C)


def multihead_attention(x, wk, wq, wv, wp, bp, *, block_batch=None):
    """x: (B, T, C); wk/wq/wv: (H, C, hs); wp: (C, C); bp: (C,)."""
    B, T, C = x.shape
    num_heads, _, head_size = wk.shape
    assert num_heads * head_size == C
    assert T <= BLOCK_SIZE
    assert T % 8 == 0 and C % 128 == 0

    # Fold the reference's C**-0.5 score scale into the query weights (exact: 1/16).
    wq_scaled = wq * (C ** -0.5)

    # (H, C, hs) -> (C, H*hs): heads packed contiguously along the output columns,
    # so head h lives at columns [h*hs, (h+1)*hs) of each projection.
    def pack(w):
        return jnp.transpose(w, (1, 0, 2)).reshape(C, num_heads * head_size)

    w_qkv = jnp.concatenate([pack(wk), pack(wq_scaled), pack(wv)], axis=1)   # (C, 3C)
    w_qkv = w_qkv.astype(jnp.bfloat16)      # bf16 MXU inputs (cast once, here)
    wp_b = wp.astype(jnp.bfloat16)
    bp2d = bp.reshape(1, C).astype(jnp.float32)
    x_bf = x.astype(jnp.bfloat16)           # halves the x HBM->VMEM DMA bytes

    # Precomputed additive causal mask (finite sentinel; no inf -> NaN risk).
    row = jnp.arange(T, dtype=jnp.int32)[:, None]
    col = jnp.arange(T, dtype=jnp.int32)[None, :]
    add_mask = jnp.where(row >= col, 0.0, -1e30).astype(jnp.float32)         # (T, T)

    # Tile several batch elements per grid step: target ~512 rows (M = BT*T) to
    # amortize the ~0.35us per-step overhead and keep the MXU pipeline busy, but
    # keep at least 2 grid steps (when B >= 2) so both v7x TensorCores get work.
    if block_batch is None:
        bt = max(1, min(B, max(1, 512 // T)))
        while B % bt != 0:
            bt -= 1
        if B >= 2 and B // bt < 2:
            bt = max(1, B // 2)
            while B % bt != 0:
                bt -= 1
        block_batch = bt
    else:
        assert B % block_batch == 0, "block_batch must divide B"
    BT = block_batch
    grid = (B // BT,)

    kernel = functools.partial(mha_kernel, num_heads=num_heads, head_size=head_size)
    return pl.pallas_call(
        kernel,
        out_shape=jax.ShapeDtypeStruct((B, T, C), jnp.float32),
        grid_spec=pltpu.PrefetchScalarGridSpec(
            num_scalar_prefetch=0,
            grid=grid,
            in_specs=[
                pl.BlockSpec((BT, T, C), lambda b: (b, 0, 0)),     # x (bf16)
                pl.BlockSpec((C, 3 * C), lambda b: (0, 0)),        # fused QKV weights
                pl.BlockSpec((C, C), lambda b: (0, 0)),            # output projection
                pl.BlockSpec((1, C), lambda b: (0, 0)),            # bias
                pl.BlockSpec((T, T), lambda b: (0, 0)),            # additive causal mask
            ],
            out_specs=pl.BlockSpec((BT, T, C), lambda b: (b, 0, 0)),
        ),
        compiler_params=pltpu.CompilerParams(
            dimension_semantics=("parallel",),   # batch tiles shard across TCs
        ),
    )(x_bf, w_qkv, wp_b, bp2d, add_mask)


if __name__ == "__main__":
    B, T = 2, 16
    C = EMBED_SIZE
    num_heads, head_size = 4, 64        # num_heads * head_size == embed_size

    key = jax.random.PRNGKey(0)
    ks = jax.random.split(key, 6)
    x = jax.random.normal(ks[0], (B, T, C), dtype=jnp.float32)
    wk = jax.random.normal(ks[1], (num_heads, C, head_size), dtype=jnp.float32) * 0.02
    wq = jax.random.normal(ks[2], (num_heads, C, head_size), dtype=jnp.float32) * 0.02
    wv = jax.random.normal(ks[3], (num_heads, C, head_size), dtype=jnp.float32) * 0.02
    wp = jax.random.normal(ks[4], (C, C), dtype=jnp.float32) * 0.02
    bp = jax.random.normal(ks[5], (C,), dtype=jnp.float32) * 0.02

    out = multihead_attention(x, wk, wq, wv, wp, bp)
    out = jax.block_until_ready(out)

    # pure-JAX f32 reference (mirrors the PyTorch forward exactly)
    def ref(xx):
        keep = jnp.tril(jnp.ones((T, T))) == 1
        outs = []
        for h in range(num_heads):
            k = xx @ wk[h]
            q = xx @ wq[h]
            v = xx @ wv[h]
            s = (k @ jnp.swapaxes(q, -1, -2)) * (C ** -0.5)
            s = jnp.where(keep, s, -jnp.inf)
            s = jax.nn.softmax(s, axis=-1)
            outs.append(s @ v)
        cat = jnp.concatenate(outs, axis=-1)
        return cat @ wp + bp

    expected = ref(x)
    assert out.shape == (B, T, C)
    # Tolerance relaxed vs the f32 reference because the kernel feeds the MXU bf16
    # inputs (f32 accumulation) — recommended for v5e/v6e/v7x throughput.
    max_diff = float(jnp.max(jnp.abs(out - expected)))
    assert jnp.allclose(out, expected, atol=2e-2, rtol=2e-2), \
        f"mismatch vs reference (max |diff| = {max_diff})"
    print("KERNEL_OK")
</pallas_src>

<mosaic_0001>
module attributes {stable_mosaic.version = 11 : i64} {
  func.func @mha_kernel(%arg0: i32, %arg1: memref<1x16x256xbf16, #tpu.memory_space<vmem>>, %arg2: memref<256x768xbf16, #tpu.memory_space<vmem>>, %arg3: memref<256x256xbf16, #tpu.memory_space<vmem>>, %arg4: memref<1x256xf32, #tpu.memory_space<vmem>>, %arg5: memref<16x16xf32, #tpu.memory_space<vmem>>, %arg6: memref<1x16x256xf32, #tpu.memory_space<vmem>>) attributes {dimension_semantics = [#tpu.dimension_semantics<parallel>], iteration_bounds = array<i64: 2>, scalar_prefetch = 0 : i64, scratch_operands = 0 : i64, tpu.core_type = #tpu.core_type<tc>, window_params = [{transform_indices = @transform_0, window_bounds = array<i64: 1, 16, 256>}, {pipeline_mode = #tpu.pipeline_mode<synchronous>, transform_indices = @transform_1, window_bounds = array<i64: 256, 768>}, {pipeline_mode = #tpu.pipeline_mode<synchronous>, transform_indices = @transform_2, window_bounds = array<i64: 256, 256>}, {pipeline_mode = #tpu.pipeline_mode<synchronous>, transform_indices = @transform_3, window_bounds = array<i64: 1, 256>}, {pipeline_mode = #tpu.pipeline_mode<synchronous>, transform_indices = @transform_4, window_bounds = array<i64: 16, 16>}, {transform_indices = @transform_5, window_bounds = array<i64: 1, 16, 256>}]} {
    %c0 = arith.constant 0 : index
    %c0_0 = arith.constant 0 : index
    %c0_1 = arith.constant 0 : index
    %0 = vector.load %arg1[%c0, %c0_0, %c0_1] : memref<1x16x256xbf16, #tpu.memory_space<vmem>>, vector<1x16x256xbf16>
    %1 = vector.shape_cast %0 : vector<1x16x256xbf16> to vector<16x256xbf16>
    %c0_2 = arith.constant 0 : index
    %c0_3 = arith.constant 0 : index
    %2 = vector.load %arg2[%c0_2, %c0_3] : memref<256x768xbf16, #tpu.memory_space<vmem>>, vector<256x768xbf16>
    %cst = arith.constant dense<0.000000e+00> : vector<16x768xf32>
    %3 = tpu.matmul %1, %2, %cst {dimension_numbers = #tpu.dot_dimension_numbers<[1], [0], [0], [1], [0, 0, 1, 1], [], []>} : vector<16x256xbf16>, vector<256x768xbf16>, vector<16x768xf32> -> vector<16x768xf32>
    %4 = arith.truncf %3 : vector<16x768xf32> to vector<16x768xbf16>
    %c0_4 = arith.constant 0 : index
    %c0_5 = arith.constant 0 : index
    %5 = vector.load %arg5[%c0_4, %c0_5] : memref<16x16xf32, #tpu.memory_space<vmem>>, vector<16x16xf32>
    %6 = vector.extract_strided_slice %4 {offsets = [0, 0], sizes = [16, 256], strides = [1, 1]} : vector<16x768xbf16> to vector<16x256xbf16>
    %7 = vector.shape_cast %6 : vector<16x256xbf16> to vector<1x16x256xbf16>
    %8 = vector.extract_strided_slice %4 {offsets = [0, 256], sizes = [16, 256], strides = [1, 1]} : vector<16x768xbf16> to vector<16x256xbf16>
    %9 = vector.shape_cast %8 : vector<16x256xbf16> to vector<1x16x256xbf16>
    %10 = vector.extract_strided_slice %4 {offsets = [0, 512], sizes = [16, 256], strides = [1, 1]} : vector<16x768xbf16> to vector<16x256xbf16>
    %11 = vector.shape_cast %10 : vector<16x256xbf16> to vector<1x16x256xbf16>
    %12 = vector.extract_strided_slice %7 {offsets = [0, 0, 0], sizes = [1, 16, 64], strides = [1, 1, 1]} : vector<1x16x256xbf16> to vector<1x16x64xbf16>
    %13 = vector.extract_strided_slice %9 {offsets = [0, 0, 0], sizes = [1, 16, 64], strides = [1, 1, 1]} : vector<1x16x256xbf16> to vector<1x16x64xbf16>
    %14 = vector.extract_strided_slice %11 {offsets = [0, 0, 0], sizes = [1, 16, 64], strides = [1, 1, 1]} : vector<1x16x256xbf16> to vector<1x16x64xbf16>
    "tpu.trace_start"() <{level = 10 : i32, message = "bth,bsh->bts"}> : () -> ()
    %cst_6 = arith.constant dense<0.000000e+00> : vector<1x16x16xf32>
    %15 = tpu.matmul %12, %13, %cst_6 {dimension_numbers = #tpu.dot_dimension_numbers<[2], [2], [1], [1], [0, 0, 0, 1, 1, 1], [0], [0]>} : vector<1x16x64xbf16>, vector<1x16x64xbf16>, vector<1x16x16xf32> -> vector<1x16x16xf32>
    "tpu.trace_stop"() : () -> ()
    %16 = vector.shape_cast %5 : vector<16x16xf32> to vector<1x16x16xf32>
    %17 = arith.addf %15, %16 : vector<1x16x16xf32>
    %cst_7 = arith.constant dense<0xFF800000> : vector<1x16xf32>
    %18 = vector.multi_reduction <maximumf>, %17, %cst_7 [2] : vector<1x16x16xf32> to vector<1x16xf32>
    %19 = vector.shape_cast %18 : vector<1x16xf32> to vector<1x16x1xf32>
    %20 = vector.broadcast %19 : vector<1x16x1xf32> to vector<1x16x16xf32>
    %21 = arith.subf %17, %20 : vector<1x16x16xf32>
    %22 = math.exp %21 : vector<1x16x16xf32>
    %cst_8 = arith.constant dense<0.000000e+00> : vector<1x16xf32>
    %23 = vector.multi_reduction <add>, %22, %cst_8 [2] : vector<1x16x16xf32> to vector<1x16xf32>
    %24 = vector.shape_cast %23 : vector<1x16xf32> to vector<1x16x1xf32>
    %25 = tpu.reciprocal %24 {approx = true} : vector<1x16x1xf32> -> vector<1x16x1xf32>
    %26 = vector.broadcast %25 : vector<1x16x1xf32> to vector<1x16x16xf32>
    %27 = arith.mulf %22, %26 : vector<1x16x16xf32>
    %28 = arith.truncf %27 : vector<1x16x16xf32> to vector<1x16x16xbf16>
    "tpu.trace_start"() <{level = 10 : i32, message = "bts,bsh->bth"}> : () -> ()
    %cst_9 = arith.constant dense<0.000000e+00> : vector<1x16x64xf32>
    %29 = tpu.matmul %28, %14, %cst_9 {dimension_numbers = #tpu.dot_dimension_numbers<[2], [1], [1], [2], [0, 0, 0, 1, 1, 2], [0], [0]>} : vector<1x16x16xbf16>, vector<1x16x64xbf16>, vector<1x16x64xf32> -> vector<1x16x64xf32>
    "tpu.trace_stop"() : () -> ()
    %30 = arith.truncf %29 : vector<1x16x64xf32> to vector<1x16x64xbf16>
    %31 = vector.extract_strided_slice %7 {offsets = [0, 0, 64], sizes = [1, 16, 64], strides = [1, 1, 1]} : vector<1x16x256xbf16> to vector<1x16x64xbf16>
    %32 = vector.extract_strided_slice %9 {offsets = [0, 0, 64], sizes = [1, 16, 64], strides = [1, 1, 1]} : vector<1x16x256xbf16> to vector<1x16x64xbf16>
    %33 = vector.extract_strided_slice %11 {offsets = [0, 0, 64], sizes = [1, 16, 64], strides = [1, 1, 1]} : vector<1x16x256xbf16> to vector<1x16x64xbf16>
    "tpu.trace_start"() <{level = 10 : i32, message = "bth,bsh->bts"}> : () -> ()
    %cst_10 = arith.constant dense<0.000000e+00> : vector<1x16x16xf32>
    %34 = tpu.matmul %31, %32, %cst_10 {dimension_numbers = #tpu.dot_dimension_numbers<[2], [2], [1], [1], [0, 0, 0, 1, 1, 1], [0], [0]>} : vector<1x16x64xbf16>, vector<1x16x64xbf16>, vector<1x16x16xf32> -> vector<1x16x16xf32>
    "tpu.trace_stop"() : () -> ()
    %35 = vector.shape_cast %5 : vector<16x16xf32> to vector<1x16x16xf32>
    %36 = arith.addf %34, %35 : vector<1x16x16xf32>
    %cst_11 = arith.constant dense<0xFF800000> : vector<1x16xf32>
    %37 = vector.multi_reduction <maximumf>, %36, %cst_11 [2] : vector<1x16x16xf32> to vector<1x16xf32>
    %38 = vector.shape_cast %37 : vector<1x16xf32> to vector<1x16x1xf32>
    %39 = vector.broadcast %38 : vector<1x16x1xf32> to vector<1x16x16xf32>
    %40 = arith.subf %36, %39 : vector<1x16x16xf32>
    %41 = math.exp %40 : vector<1x16x16xf32>
    %cst_12 = arith.constant dense<0.000000e+00> : vector<1x16xf32>
    %42 = vector.multi_reduction <add>, %41, %cst_12 [2] : vector<1x16x16xf32> to vector<1x16xf32>
    %43 = vector.shape_cast %42 : vector<1x16xf32> to vector<1x16x1xf32>
    %44 = tpu.reciprocal %43 {approx = true} : vector<1x16x1xf32> -> vector<1x16x1xf32>
    %45 = vector.broadcast %44 : vector<1x16x1xf32> to vector<1x16x16xf32>
    %46 = arith.mulf %41, %45 : vector<1x16x16xf32>
    %47 = arith.truncf %46 : vector<1x16x16xf32> to vector<1x16x16xbf16>
    "tpu.trace_start"() <{level = 10 : i32, message = "bts,bsh->bth"}> : () -> ()
    %cst_13 = arith.constant dense<0.000000e+00> : vector<1x16x64xf32>
    %48 = tpu.matmul %47, %33, %cst_13 {dimension_numbers = #tpu.dot_dimension_numbers<[2], [1], [1], [2], [0, 0, 0, 1, 1, 2], [0], [0]>} : vector<1x16x16xbf16>, vector<1x16x64xbf16>, vector<1x16x64xf32> -> vector<1x16x64xf32>
    "tpu.trace_stop"() : () -> ()
    %49 = arith.truncf %48 : vector<1x16x64xf32> to vector<1x16x64xbf16>
    %50 = vector.extract_strided_slice %7 {offsets = [0, 0, 128], sizes = [1, 16, 64], strides = [1, 1, 1]} : vector<1x16x256xbf16> to vector<1x16x64xbf16>
    %51 = vector.extract_strided_slice %9 {offsets = [0, 0, 128], sizes = [1, 16, 64], strides = [1, 1, 1]} : vector<1x16x256xbf16> to vector<1x16x64xbf16>
    %52 = vector.extract_strided_slice %11 {offsets = [0, 0, 128], sizes = [1, 16, 64], strides = [1, 1, 1]} : vector<1x16x256xbf16> to vector<1x16x64xbf16>
    "tpu.trace_start"() <{level = 10 : i32, message = "bth,bsh->bts"}> : () -> ()
    %cst_14 = arith.constant dense<0.000000e+00> : vector<1x16x16xf32>
    %53 = tpu.matmul %50, %51, %cst_14 {dimension_numbers = #tpu.dot_dimension_numbers<[2], [2], [1], [1], [0, 0, 0, 1, 1, 1], [0], [0]>} : vector<1x16x64xbf16>, vector<1x16x64xbf16>, vector<1x16x16xf32> -> vector<1x16x16xf32>
    "tpu.trace_stop"() : () -> ()
    %54 = vector.shape_cast %5 : vector<16x16xf32> to vector<1x16x16xf32>
    %55 = arith.addf %53, %54 : vector<1x16x16xf32>
    %cst_15 = arith.constant dense<0xFF800000> : vector<1x16xf32>
    %56 = vector.multi_reduction <maximumf>, %55, %cst_15 [2] : vector<1x16x16xf32> to vector<1x16xf32>
    %57 = vector.shape_cast %56 : vector<1x16xf32> to vector<1x16x1xf32>
    %58 = vector.broadcast %57 : vector<1x16x1xf32> to vector<1x16x16xf32>
    %59 = arith.subf %55, %58 : vector<1x16x16xf32>
    %60 = math.exp %59 : vector<1x16x16xf32>
    %cst_16 = arith.constant dense<0.000000e+00> : vector<1x16xf32>
    %61 = vector.multi_reduction <add>, %60, %cst_16 [2] : vector<1x16x16xf32> to vector<1x16xf32>
    %62 = vector.shape_cast %61 : vector<1x16xf32> to vector<1x16x1xf32>
    %63 = tpu.reciprocal %62 {approx = true} : vector<1x16x1xf32> -> vector<1x16x1xf32>
    %64 = vector.broadcast %63 : vector<1x16x1xf32> to vector<1x16x16xf32>
    %65 = arith.mulf %60, %64 : vector<1x16x16xf32>
    %66 = arith.truncf %65 : vector<1x16x16xf32> to vector<1x16x16xbf16>
    "tpu.trace_start"() <{level = 10 : i32, message = "bts,bsh->bth"}> : () -> ()
    %cst_17 = arith.constant dense<0.000000e+00> : vector<1x16x64xf32>
    %67 = tpu.matmul %66, %52, %cst_17 {dimension_numbers = #tpu.dot_dimension_numbers<[2], [1], [1], [2], [0, 0, 0, 1, 1, 2], [0], [0]>} : vector<1x16x16xbf16>, vector<1x16x64xbf16>, vector<1x16x64xf32> -> vector<1x16x64xf32>
    "tpu.trace_stop"() : () -> ()
    %68 = arith.truncf %67 : vector<1x16x64xf32> to vector<1x16x64xbf16>
    %69 = vector.extract_strided_slice %7 {offsets = [0, 0, 192], sizes = [1, 16, 64], strides = [1, 1, 1]} : vector<1x16x256xbf16> to vector<1x16x64xbf16>
    %70 = vector.extract_strided_slice %9 {offsets = [0, 0, 192], sizes = [1, 16, 64], strides = [1, 1, 1]} : vector<1x16x256xbf16> to vector<1x16x64xbf16>
    %71 = vector.extract_strided_slice %11 {offsets = [0, 0, 192], sizes = [1, 16, 64], strides = [1, 1, 1]} : vector<1x16x256xbf16> to vector<1x16x64xbf16>
    "tpu.trace_start"() <{level = 10 : i32, message = "bth,bsh->bts"}> : () -> ()
    %cst_18 = arith.constant dense<0.000000e+00> : vector<1x16x16xf32>
    %72 = tpu.matmul %69, %70, %cst_18 {dimension_numbers = #tpu.dot_dimension_numbers<[2], [2], [1], [1], [0, 0, 0, 1, 1, 1], [0], [0]>} : vector<1x16x64xbf16>, vector<1x16x64xbf16>, vector<1x16x16xf32> -> vector<1x16x16xf32>
    "tpu.trace_stop"() : () -> ()
    %73 = vector.shape_cast %5 : vector<16x16xf32> to vector<1x16x16xf32>
    %74 = arith.addf %72, %73 : vector<1x16x16xf32>
    %cst_19 = arith.constant dense<0xFF800000> : vector<1x16xf32>
    %75 = vector.multi_reduction <maximumf>, %74, %cst_19 [2] : vector<1x16x16xf32> to vector<1x16xf32>
    %76 = vector.shape_cast %75 : vector<1x16xf32> to vector<1x16x1xf32>
    %77 = vector.broadcast %76 : vector<1x16x1xf32> to vector<1x16x16xf32>
    %78 = arith.subf %74, %77 : vector<1x16x16xf32>
    %79 = math.exp %78 : vector<1x16x16xf32>
    %cst_20 = arith.constant dense<0.000000e+00> : vector<1x16xf32>
    %80 = vector.multi_reduction <add>, %79, %cst_20 [2] : vector<1x16x16xf32> to vector<1x16xf32>
    %81 = vector.shape_cast %80 : vector<1x16xf32> to vector<1x16x1xf32>
    %82 = tpu.reciprocal %81 {approx = true} : vector<1x16x1xf32> -> vector<1x16x1xf32>
    %83 = vector.broadcast %82 : vector<1x16x1xf32> to vector<1x16x16xf32>
    %84 = arith.mulf %79, %83 : vector<1x16x16xf32>
    %85 = arith.truncf %84 : vector<1x16x16xf32> to vector<1x16x16xbf16>
    "tpu.trace_start"() <{level = 10 : i32, message = "bts,bsh->bth"}> : () -> ()
    %cst_21 = arith.constant dense<0.000000e+00> : vector<1x16x64xf32>
    %86 = tpu.matmul %85, %71, %cst_21 {dimension_numbers = #tpu.dot_dimension_numbers<[2], [1], [1], [2], [0, 0, 0, 1, 1, 2], [0], [0]>} : vector<1x16x16xbf16>, vector<1x16x64xbf16>, vector<1x16x64xf32> -> vector<1x16x64xf32>
    "tpu.trace_stop"() : () -> ()
    %87 = arith.truncf %86 : vector<1x16x64xf32> to vector<1x16x64xbf16>
    %88 = tpu.concatenate %30, %49, %68, %87 in 2 : vector<1x16x64xbf16>, vector<1x16x64xbf16>, vector<1x16x64xbf16>, vector<1x16x64xbf16> -> vector<1x16x256xbf16>
    %89 = vector.shape_cast %88 : vector<1x16x256xbf16> to vector<16x256xbf16>
    %c0_22 = arith.constant 0 : index
    %c0_23 = arith.constant 0 : index
    %90 = vector.load %arg3[%c0_22, %c0_23] : memref<256x256xbf16, #tpu.memory_space<vmem>>, vector<256x256xbf16>
    %cst_24 = arith.constant dense<0.000000e+00> : vector<16x256xf32>
    %91 = tpu.matmul %89, %90, %cst_24 {dimension_numbers = #tpu.dot_dimension_numbers<[1], [0], [0], [1], [0, 0, 1, 1], [], []>} : vector<16x256xbf16>, vector<256x256xbf16>, vector<16x256xf32> -> vector<16x256xf32>
    %c0_25 = arith.constant 0 : index
    %c0_26 = arith.constant 0 : index
    %92 = vector.load %arg4[%c0_25, %c0_26] : memref<1x256xf32, #tpu.memory_space<vmem>>, vector<1x256xf32>
    %93 = vector.broadcast %92 : vector<1x256xf32> to vector<16x256xf32>
    %94 = arith.addf %91, %93 : vector<16x256xf32>
    %95 = vector.shape_cast %94 : vector<16x256xf32> to vector<1x16x256xf32>
    %c0_27 = arith.constant 0 : index
    %c0_28 = arith.constant 0 : index
    %c0_29 = arith.constant 0 : index
    %96 = vector.load %arg6[%c0_27, %c0_28, %c0_29] : memref<1x16x256xf32, #tpu.memory_space<vmem>>, vector<1x16x256xf32>
    tpu.vector_store %arg6[%c0_27, %c0_28, %c0_29], %95 {strides = array<i32>} : memref<1x16x256xf32, #tpu.memory_space<vmem>>, vector<1x16x256xf32>,
    return
  }
  func.func @transform_0(%arg0: i32) -> (i32, i32, i32) {
    %c0_i32 = arith.constant 0 : i32
    %c0_i32_0 = arith.constant 0 : i32
    %c0_i32_1 = arith.constant 0 : i32
    return %arg0, %c0_i32, %c0_i32_0 : i32, i32, i32
  }
  func.func @transform_1(%arg0: i32) -> (i32, i32) {
    %c0_i32 = arith.constant 0 : i32
    %c0_i32_0 = arith.constant 0 : i32
    %c0_i32_1 = arith.constant 0 : i32
    return %c0_i32, %c0_i32_0 : i32, i32
  }
  func.func @transform_2(%arg0: i32) -> (i32, i32) {
    %c0_i32 = arith.constant 0 : i32
    %c0_i32_0 = arith.constant 0 : i32
    %c0_i32_1 = arith.constant 0 : i32
    return %c0_i32, %c0_i32_0 : i32, i32
  }
  func.func @transform_3(%arg0: i32) -> (i32, i32) {
    %c0_i32 = arith.constant 0 : i32
    %c0_i32_0 = arith.constant 0 : i32
    %c0_i32_1 = arith.constant 0 : i32
    return %c0_i32, %c0_i32_0 : i32, i32
  }
  func.func @transform_4(%arg0: i32) -> (i32, i32) {
    %c0_i32 = arith.constant 0 : i32
    %c0_i32_0 = arith.constant 0 : i32
    %c0_i32_1 = arith.constant 0 : i32
    return %c0_i32, %c0_i32_0 : i32, i32
  }
  func.func @transform_5(%arg0: i32) -> (i32, i32, i32) {
    %c0_i32 = arith.constant 0 : i32
    %c0_i32_0 = arith.constant 0 : i32
    %c0_i32_1 = arith.constant 0 : i32
    return %arg0, %c0_i32, %c0_i32_0 : i32, i32, i32
  }
}

</mosaic_0001>

<bundles_post_ra>
// kernel: tpu_custom_call.1
= control target key start
LH: loop header
LB: loop body
LE: loop exit
PB: predicated region body
PF: predicated region fallthrough
CT: control target
= control target key end

     0   :  { %10 = vsyncpa [#allocation3], 0  ;;  %s2984_s0 = inlined_call_operand.hbm [shape: bf16[2,16,256], index: 0, kind: input, shape index: {}]   ;;  %s2985_s1 = inlined_call_operand.hbm [shape: bf16[256,768], index: 1, kind: input, shape index: {}]   ;;  %s2986_s2 = inlined_call_operand.hbm [shape: bf16[256,256], index: 2, kind: input, shape index: {}]   ;;  %s2987_s3 = inlined_call_operand.vmem [shape: f32[1,256], index: 3, kind: input, shape index: {}]   ;;  %s2988_s4 = inlined_call_operand.hbm [shape: f32[16,16], index: 4, kind: input, shape index: {}]   ;;  %s2989_s5 = inlined_call_operand.hbm [shape: f32[2,16,256], index: 5, kind: output, shape index: {}]  }
   0x1   :  { %12 = vsyncpa [#allocation3 + $0x1], 0 }
   0x2   :  { %13 = vsyncpa [#allocation6], 0 }
   0x3   :  { %14 = vsyncpa [#allocation9], 0 }
   0x4   :  { %15 = vsyncpa [#allocation4], 0 }
   0x5   :  { %17 = vsyncpa [#allocation4 + $0x1], 0  ;;  %s2637_s18 = smov 0   ;;  %s2639_s19 = smov 0  }
   0x6   :  { %s2641_s20 = smov 0   ;;  %s2643_s21 = smov 0  }
   0x7 LB: > { %s2658_s22 = sadd.s32 4294967295, %s2591_s21   ;;  %s1876_s23 = sadd.s32 4294967294, %s2591_s21   ;;  %s2591_s21 = sphi %s2643_s21, %s3015_s21   ;;  %s2587_s20 = sphi %s2641_s20, %s3014_s20   ;;  %s2583_s19 = sphi %s2639_s19, %s3013_s19   ;;  %s2579_s18 = sphi %s2637_s18, %s3012_s18  }
   0x8   : > { %p43_p0 = scmp.ne.s32.totalorder %s2583_s19, %s2579_s18  ;;  %p2990_p1 = scmp.eq.s32.totalorder %s2658_s22, 0 }
   0x9   : > { %p157_p3 = scmp.eq.s32.totalorder %s1876_s23, 1  ;;  %p1877_p5 = scmp.ge.s32.totalorder %s2591_s21, 1 }
   0xa   : > { %p2667_p4 = por %p2990_p1, %p43_p0  ;;  %p164_p7 = scmp.lt.s32.totalorder %s2591_s21, 3 }
   0xb   : > { %p2672_p6 = por %p157_p3, %p43_p0  ;;  %s2593_s27 = smov [#allocation5]  }
   0xc   : > { %s2995_s24 = scalar_select %p2667_p4, 1, 0 }
   0xd   : > { %s2996_s25 = scalar_select %p2672_p6, 1, 0 }
   0xe   : > { %p2677_p8 = pnand %p1877_p5, %p164_p7  ;;  %s176_s28 = sshll.u32 %s2593_s27, 4  ;;  %s177_s28 = int_to_ptr.vmem [resolvable:$true] %s176_s28 }
   0xf   : > { %s2594_s30 = smov [#allocation7]   ;;  %s2424_s7 = scalar_lea.vmem %s177_s28, 12288 }
  0x10   : > { %s2997_s26 = scalar_select %p2677_p8, 1, 0 }
  0x11   : > { %p2116_p9 = pneg %p2677_p8  ;;  %s189_s6 = sshll.u32 %s2594_s30, 4  ;;  %s190_s6 = int_to_ptr.vmem [resolvable:$true] %s189_s6 }
  0x12   : > { %p2425_p13 = scmp.ne.s32.totalorder %s177_s28, %s2424_s7  ;;  %p2432_p5 = scmp.lt.s32.totalorder %s177_s28, %s177_s28 }
  0x13   : > { %p2686_p11 = pnand %p2116_p9, %p2990_p1  ;;  %p2433_p7 = scmp.lt.s32.totalorder %s2424_s7, %s2424_s7 }
  0x15   : > { %p2415_p12 = pneg %p2686_p11  ;;  %p2434_p10 = por %p2433_p7, %p2432_p5 }
  0x17   : > { %p2427_p0 = pnand %p2425_p13, %p2415_p12 }
  0x19   : > { %p2428_p3 = pneg %p2427_p0 }
  0x1b   : > { %p2435_p9 = pnand %p2434_p10, %p2428_p3 }
  0x1d   : > { %2438 = shalt.err (!%p2435_p9)
}
  0x1e   : > { %s2595_s8 = smov 384   ;;  %s2596_s9 = smov 24  }
  0x1f   : > { %2119 = dma.hbm_to_vmem [thread:$0]  (!%p2686_p11), %s2985_s1, 12288, %s177_s28, [#allocation6], %s2595_s8, %s2595_s8, %s2596_s9  }
  0x20   : > { %s2450_s12 = scalar_lea.vmem %s190_s6, 4096  ;;  %p2458_p2 = scmp.lt.s32.totalorder %s190_s6, %s190_s6 }
  0x21   : > { %p2451_p1 = scmp.ne.s32.totalorder %s190_s6, %s2450_s12  ;;  %p2459_p6 = scmp.lt.s32.totalorder %s2450_s12, %s2450_s12 }
  0x23   : > { %p2453_p13 = pnand %p2451_p1, %p2415_p12  ;;  %p2460_p5 = por %p2459_p6, %p2458_p2 }
  0x25   : > { %p2454_p0 = pneg %p2453_p13 }
  0x27   : > { %p2461_p10 = pnand %p2460_p5, %p2454_p0 }
  0x29   : > { %2464 = shalt.err (!%p2461_p10)
}
  0x2a   : > { %s2991_s13 = smov 128   ;;  %s2598_s14 = smov 8  }
  0x2b   : > { %2122 = dma.hbm_to_vmem [thread:$0]  (!%p2686_p11), %s2986_s2, 4096, %s190_s6, [#allocation6], %s2991_s13, %s2991_s13, %s2598_s14  }
  0x2c   : > { %s2599_s17 = smov [#allocation8]   ;;  %s2712_s27 = sadd.s32 1, %s2591_s21  }
  0x2d   : > { %s205_s23 = sshll.u32 %s2599_s17, 4  ;;  %s206_s23 = int_to_ptr.vmem [resolvable:$true] %s205_s23 }
  0x2e   : > { %s2476_s28 = scalar_lea.vmem %s206_s23, 256  ;;  %p2484_p3 = scmp.lt.s32.totalorder %s206_s23, %s206_s23 }
  0x2f   : > { %p2477_p1 = scmp.ne.s32.totalorder %s206_s23, %s2476_s28  ;;  %p2485_p7 = scmp.lt.s32.totalorder %s2476_s28, %s2476_s28 }
  0x31   : > { %p2479_p2 = pnand %p2477_p1, %p2415_p12  ;;  %p2486_p9 = por %p2485_p7, %p2484_p3 }
  0x33   : > { %p2480_p6 = pneg %p2479_p2 }
  0x35   : > { %p2487_p13 = pnand %p2486_p9, %p2480_p6 }
  0x37   : > { %2490 = shalt.err (!%p2487_p13)
}
  0x38   : > { %2125 = dma.hbm_to_vmem [thread:$0]  (!%p2686_p11), %s2988_s4, 256, %s206_s23, [#allocation9], %s2991_s13, %s2991_s13, %s2598_s14  }
  0x39   : > { %s27_s7 = ssub.s32 %s2591_s21, %s2712_s27  ;;  %s30_s29 = sadd.s32 1, %s2587_s20 }
  0x3a   : > { %p28_p12 = scmp.eq.s32.totalorder %s27_s7, 0  ;;  %p37_p0 = scmp.ne.s32.totalorder %s2587_s20, %s2583_s19 }
  0x3b   : > { %p38_p5 = scmp.eq.s32.totalorder %s2591_s21, 0  ;;  %p2137_p10 = scmp.lt.s32.totalorder %s2591_s21, 2 }
  0x3c   : > { %s2733_s8 = scalar_select %p28_p12, %s2587_s20, %s30_s29  }
  0x3d   : > { %p39_p1 = por %p38_p5, %p37_p0  ;;  %p2999_p2 = scmp.eq.s32.totalorder %s2658_s22, 1 }
  0x3e   : > { %s219_s10 = sand.u32 1, %s2587_s20   ;;  %s2034_s11 = sshll.u32 %s2591_s21, 8 }
  0x3f   : > { %p2737_p6 = por %p2999_p2, %p37_p0  ;;  %s1882_s12 = sshll.u32 %s219_s10, 4 }
  0x40   : > { %s2746_s17 = scalar_lea.hbm %s2984_s0, %s2034_s11  ;;  %s223_s23 = scalar_lea.vmem [#allocation2], %s1882_s12 }
  0x41   : > { %s3000_s9 = scalar_select %p2737_p6, 1, 0 }
  0x42   : > { %s230_s28 = sshll.u32 %s223_s23, 4  ;;  %p2748_p11 = pnand %p2137_p10, %p39_p1  ;;  %s2752_s28 = int_to_ptr.vmem [resolvable:$true] %s230_s28 }
  0x43   : > { %s2754_s6 = scalar_lea.sflag [#allocation3], %s219_s10  ;;  %s2491_s7 = scalar_lea.hbm %s2746_s17, 256 }
  0x44   : > { %p2492_p3 = scmp.ne.s32.totalorder %s2746_s17, %s2491_s7  ;;  %p2493_p7 = pneg %p2748_p11 }
  0x45   : > { %s2496_s12 = scalar_lea.hbm %s2984_s0, 512  ;;  %p2497_p12 = scmp.lt.s32.totalorder %s2746_s17, %s2984_s0 }
  0x46   : > { %p2494_p9 = pnand %p2493_p7, %p2492_p3  ;;  %p2498_p0 = scmp.lt.s32.totalorder %s2496_s12, %s2491_s7 }
  0x48   : > { %p2495_p13 = pneg %p2494_p9  ;;  %p2499_p5 = por %p2498_p0, %p2497_p12 }
  0x4a   : > { %p2500_p10 = pnand %p2499_p5, %p2495_p13 }
  0x4c   : > { %2503 = shalt.err (!%p2500_p10)
}
  0x4d   : > { %s2504_s10 = scalar_lea.vmem %s2752_s28, 256  ;;  %s2600_s23 = smov [#allocation2]  }
  0x4e   : > { %p2505_p1 = scmp.ne.s32.totalorder %s2752_s28, %s2504_s10  ;;  %s2509_s13 = sshll.u32 %s2600_s23, 4  ;;  %s2510_s13 = int_to_ptr.vmem [resolvable:$false] %s2509_s13 }
  0x4f   : > { %s2511_s29 = scalar_lea.vmem %s2510_s13, 512  ;;  %p2512_p9 = scmp.lt.s32.totalorder %s2752_s28, %s2510_s13 }
  0x50   : > { %p2507_p2 = pnand %p2505_p1, %p2493_p7  ;;  %p2513_p6 = scmp.lt.s32.totalorder %s2511_s29, %s2504_s10 }
  0x52   : > { %p2508_p3 = pneg %p2507_p2  ;;  %p2514_p4 = por %p2513_p6, %p2512_p9 }
  0x54   : > { %p2515_p8 = pnand %p2514_p4, %p2508_p3 }
  0x56   : > { %2518 = shalt.err (!%p2515_p8)
}
  0x57   : > { %s3002_s7 = smov 128   ;;  %p3003_p7 = scmp.ne.s32.totalorder %s2997_s26, 0 }
  0x58   : > { %2129 = dma.hbm_to_vmem [thread:$0]  (!%p2748_p11), %s2746_s17, 256, %s2752_s28, %s2754_s6, %s3002_s7, %s3002_s7, %s2598_s14  }
  0x59   : > { %242 = sbr.rel (%p3003_p7) target bundleno = 2984 (0xba8), region = 40  ;;  %s2781_s11 = sand.u32 (!%p3003_p7), 1, %s2583_s19  }
  0x5a   : > { %s1886_s13 = sshll.u32 (!%p3003_p7), %s2781_s11, 4  ;;  %s245_s12 = scalar_lea.sflag (!%p3003_p7), [#allocation3], %s2781_s11 }
  0x5b   : > { %s2785_s15 = scalar_lea.vmem (!%p3003_p7), [#allocation2], %s1886_s13  ;;  %p3004_p4 = scmp.ne.s32.totalorder (!%p3003_p7), %s2995_s24, 0 }
  0x5e   : > { %2562 = dma.done.wait (%p3004_p4), %s245_s12, 256  }
  0x5f   : > { %2564 = vsyncadd (%p3004_p4), %s245_s12, 4294967040  ;;  %p3005_p8 = scmp.eq.s32.totalorder %s2658_s22, 0 }
  0x61   : > { %2566 = dma.done.wait (%p3005_p8), [#allocation6], 16384   ;;  %p3006_p6 = pmov %p3005_p8 }
  0x63   : > { %2568 = vsyncadd (%p3006_p6), [#allocation6], 4294950912  ;;  %p3007_p11 = pmov %p3006_p6 }
  0x64   : > { %p3008_p13 = pmov %p3006_p6 }
  0x65   : > { %2570 = dma.done.wait (%p3007_p11), [#allocation9], 256  }
  0x66   : > { %2572 = vsyncadd (%p3008_p13), [#allocation9], 4294967040  ;;  %v2186_v0 = vld [vmem:[#allocation5 + $0x15c] ss:$24 sps:$4 sm:$0xff]   ;;  %v2188_v1 = vld [vmem:[#allocation5 + $0x158] ss:$24 sps:$4 sm:$0xff]  }
  0x67   : > { %919 = vmatprep.subr.bf16.mxu1 %v2186_v0  ;;  %v2189_v2 = vld [vmem:[#allocation5 + $0x154] ss:$24 sps:$4 sm:$0xff]   ;;  %v2191_v3 = vld [vmem:[#allocation5 + $0x150] ss:$24 sps:$4 sm:$0xff]   ;;  %v2195_v6 = vld [vmem:[#allocation5 + $0x124] ss:$24 sps:$4 sm:$0xff]  }
  0x68   : > { %920 = vmatpush1.bf16.msra.mxu1 %v2188_v1  ;;  %v2192_v4 = vld [vmem:[#allocation5 + $0x12c] ss:$24 sps:$4 sm:$0xff]   ;;  %v2194_v5 = vld [vmem:[#allocation5 + $0x128] ss:$24 sps:$4 sm:$0xff]   ;;  %876 = vmatprep.subr.bf16.mxu0 %v2189_v2  ;;  %v2198_v8 = vld [vmem:[#allocation5 + $0xfc] ss:$24 sps:$4 sm:$0xff]  }
  0x69   : > { %877 = vmatpush1.bf16.msra.mxu0 %v2191_v3  ;;  %921 = vmatprep.subr.bf16.mxu1 %v2192_v4  ;;  %v2197_v7 = vld [vmem:[#allocation5 + $0x120] ss:$24 sps:$4 sm:$0xff]   ;;  %v2201_v10 = vld [vmem:[#allocation5 + $0xf4] ss:$24 sps:$4 sm:$0xff]   ;;  %v2203_v12 = vld [vmem:[#allocation5 + $0xf0] ss:$24 sps:$4 sm:$0xff]  }
  0x6a   : > { %878 = vmatprep.subr.bf16.mxu0 %v2195_v6  ;;  %v2200_v9 = vld [vmem:[#allocation5 + $0xf8] ss:$24 sps:$4 sm:$0xff]   ;;  %v2204_v11 = vld [vmem:[#allocation5 + $0xcc] ss:$24 sps:$4 sm:$0xff]   ;;  %v2206_v14 = vld [vmem:[#allocation5 + $0xc8] ss:$24 sps:$4 sm:$0xff]  }
  0x6b   : > { %v2207_v13 = vld [vmem:[#allocation5 + $0xc4] ss:$24 sps:$4 sm:$0xff]   ;;  %v2209_v16 = vld [vmem:[#allocation5 + $0xc0] ss:$24 sps:$4 sm:$0xff]   ;;  %v2213_v17 = vld [vmem:[#allocation5 + $0x94] ss:$24 sps:$4 sm:$0xff]  }
  0x6c   : > { %922 = vmatpush1.bf16.msra.mxu1 %v2194_v5  ;;  %v2210_v15 = vld [vmem:[#allocation5 + $0x9c] ss:$24 sps:$4 sm:$0xff]   ;;  %v2212_v18 = vld [vmem:[#allocation5 + $0x98] ss:$24 sps:$4 sm:$0xff]   ;;  %v2216_v19 = vld [vmem:[#allocation5 + $0x6c] ss:$24 sps:$4 sm:$0xff]  }
  0x6d   : > { %923 = vmatprep.subr.bf16.mxu1 %v2198_v8  ;;  %879 = vmatpush1.bf16.msra.mxu0 %v2197_v7  ;;  %v2215_v20 = vld [vmem:[#allocation5 + $0x90] ss:$24 sps:$4 sm:$0xff]   ;;  %v2219_v21 = vld [vmem:[#allocation5 + $0x64] ss:$24 sps:$4 sm:$0xff]   ;;  %v2221_v24 = vld [vmem:[#allocation5 + $0x60] ss:$24 sps:$4 sm:$0xff]  }
  0x6e   : > { %880 = vmatprep.subr.bf16.mxu0 %v2201_v10  ;;  %v2218_v22 = vld [vmem:[#allocation5 + $0x68] ss:$24 sps:$4 sm:$0xff]   ;;  %v2222_v23 = vld [vmem:[#allocation5 + $0x3c] ss:$24 sps:$4 sm:$0xff]   ;;  %v2224_v26 = vld [vmem:[#allocation5 + $0x38] ss:$24 sps:$4 sm:$0xff]  }
  0x6f   : > { %v2225_v25 = vld [vmem:[#allocation5 + $0x34] ss:$24 sps:$4 sm:$0xff]   ;;  %v2227_v28 = vld [vmem:[#allocation5 + $0x30] ss:$24 sps:$4 sm:$0xff]   ;;  %v2231_v29 = vld [vmem:[#allocation5 + $0x4] ss:$24 sps:$4 sm:$0xff]  }
  0x70   : > { %924 = vmatpush1.bf16.msra.mxu1 %v2200_v9  ;;  %v2228_v27 = vld [vmem:[#allocation5 + $0xc] ss:$24 sps:$4 sm:$0xff]   ;;  %v2230_v30 = vld [vmem:[#allocation5 + $0x8] ss:$24 sps:$4 sm:$0xff]   ;;  %v2234_v31 = vld [vmem:[#allocation5 + $0x2dc] ss:$24 sps:$4 sm:$0xff]  }
  0x71   : > { %925 = vmatprep.subr.bf16.mxu1 %v2204_v11  ;;  %881 = vmatpush1.bf16.msra.mxu0 %v2203_v12  ;;  %v2233_v32 = vld [vmem:[#allocation5] ss:$24 sps:$4 sm:$0xff]   ;;  %v2237_v33 = vld [vmem:[#allocation5 + $0x2d4] ss:$24 sps:$4 sm:$0xff]   ;;  %v2239_v36 = vld [vmem:[#allocation5 + $0x2d0] ss:$24 sps:$4 sm:$0xff]  }
  0x72   : > { %882 = vmatprep.subr.bf16.mxu0 %v2207_v13  ;;  %v2236_v34 = vld [vmem:[#allocation5 + $0x2d8] ss:$24 sps:$4 sm:$0xff]   ;;  %v2240_v35 = vld [vmem:[#allocation5 + $0x2ac] ss:$24 sps:$4 sm:$0xff]   ;;  %v2242_v38 = vld [vmem:[#allocation5 + $0x2a8] ss:$24 sps:$4 sm:$0xff]  }
  0x73   : > { %v2243_v37 = vld [vmem:[#allocation5 + $0x2a4] ss:$24 sps:$4 sm:$0xff]   ;;  %v2245_v40 = vld [vmem:[#allocation5 + $0x2a0] ss:$24 sps:$4 sm:$0xff]   ;;  %v2249_v41 = vld [vmem:[#allocation5 + $0x274] ss:$24 sps:$4 sm:$0xff]  }
  0x74   : > { %926 = vmatpush1.bf16.msra.mxu1 %v2206_v14  ;;  %v2246_v39 = vld [vmem:[#allocation5 + $0x27c] ss:$24 sps:$4 sm:$0xff]   ;;  %v2248_v42 = vld [vmem:[#allocation5 + $0x278] ss:$24 sps:$4 sm:$0xff]   ;;  %v2252_v44 = vld [vmem:[#allocation5 + $0x24c] ss:$24 sps:$4 sm:$0xff]  }
  0x75   : > { %927 = vmatprep.subr.bf16.mxu1 %v2210_v15  ;;  %883 = vmatpush1.bf16.msra.mxu0 %v2209_v16  ;;  %v2251_v43 = vld [vmem:[#allocation5 + $0x270] ss:$24 sps:$4 sm:$0xff]   ;;  %v2255_v46 = vld [vmem:[#allocation5 + $0x244] ss:$24 sps:$4 sm:$0xff]   ;;  %v2257_v47 = vld [vmem:[#allocation5 + $0x240] ss:$24 sps:$4 sm:$0xff]  }
  0x76   : > { %884 = vmatprep.subr.bf16.mxu0 %v2213_v17  ;;  %v2254_v45 = vld [vmem:[#allocation5 + $0x248] ss:$24 sps:$4 sm:$0xff]   ;;  %v2258_v48 = vld [vmem:[#allocation5 + $0x21c] ss:$24 sps:$4 sm:$0xff]   ;;  %v2260_v51 = vld [vmem:[#allocation5 + $0x218] ss:$24 sps:$4 sm:$0xff]  }
  0x77   : > { %v2281_v49 = vld [vmem:[%s2785_s15 + $0x4] ss:$8 sps:$4 sm:$0xff]   ;;  %v2263_v53 = vld [vmem:[#allocation5 + $0x210] ss:$24 sps:$4 sm:$0xff]   ;;  %v2269_v57 = vld [vmem:[#allocation5 + $0x1e0] ss:$24 sps:$4 sm:$0xff]  }
  0x78   : > { %928 = vmatpush1.bf16.msra.mxu1 %v2212_v18  ;;  %v2261_v50 = vld [vmem:[#allocation5 + $0x214] ss:$24 sps:$4 sm:$0xff]   ;;  %951 = vmatprep.mubr.bf16.mxu1 %v2281_v49  ;;  %v2267_v54 = vld [vmem:[#allocation5 + $0x1e4] ss:$24 sps:$4 sm:$0xff]   ;;  %v2266_v55 = vld [vmem:[#allocation5 + $0x1e8] ss:$24 sps:$4 sm:$0xff]  }
  0x79   : > { %929 = vmatprep.subr.bf16.mxu1 %v2216_v19  ;;  %885 = vmatpush1.bf16.msra.mxu0 %v2215_v20  ;;  %v2264_v52 = vld [vmem:[#allocation5 + $0x1ec] ss:$24 sps:$4 sm:$0xff]   ;;  %v2270_v56 = vld [vmem:[#allocation5 + $0x1bc] ss:$24 sps:$4 sm:$0xff]   ;;  %v2272_v59 = vld [vmem:[#allocation5 + $0x1b8] ss:$24 sps:$4 sm:$0xff]  }
  0x7a   : > { %886 = vmatprep.subr.bf16.mxu0 %v2219_v21  ;;  %908 = vmatprep.mubr.bf16.mxu0 %v2281_v49  ;;  %v2273_v58 = vld [vmem:[#allocation5 + $0x1b4] ss:$24 sps:$4 sm:$0xff]   ;;  %v2275_v61 = vld [vmem:[#allocation5 + $0x1b0] ss:$24 sps:$4 sm:$0xff]   ;;  %v2279_v62 = vld [vmem:[#allocation5 + $0x184] ss:$24 sps:$4 sm:$0xff]  }
  0x7b   : > { %v2276_v60 = vld [vmem:[#allocation5 + $0x18c] ss:$24 sps:$4 sm:$0xff]   ;;  %v2278_v63 = vld [vmem:[#allocation5 + $0x188] ss:$24 sps:$4 sm:$0xff]   ;;  %v2601_v2 = vmov 0.0   ;;  %vm2602_vm0 = vmmov 0  }
  0x7c   : > { %930 = vmatpush1.bf16.msra.mxu1 %v2218_v22  ;;  %v2283_v0 = vld [vmem:[#allocation5 + $0x180] ss:$24 sps:$4 sm:$0xff]   ;;  %vm1013_vm1 = vcmask 523264   ;;  %v2287_v13 = vld [vmem:[#allocation5 + $0x164] ss:$24 sps:$4 sm:$0xff]   ;;  %vm1061_vm2 = vcmask 130048  }
  0x7d   : > { %931 = vmatprep.subr.bf16.mxu1 %v2222_v23  ;;  %887 = vmatpush1.bf16.msra.mxu0 %v2221_v24  ;;  %v2801_v1 = vld [vmem:[%s2785_s15] ss:$8 sps:$4 sm:$0xff]   ;;  %v2290_v14 = vld [vmem:[#allocation5 + $0x134] ss:$24 sps:$4 sm:$0xff]   ;;  %v2293_v16 = vld [vmem:[#allocation5 + $0x104] ss:$24 sps:$4 sm:$0xff]  }
  0x7e   : > { %888 = vmatprep.subr.bf16.mxu0 %v2225_v25  ;;  %v2285_v12 = vld [vmem:[#allocation5 + $0x160] ss:$24 sps:$4 sm:$0xff]   ;;  %v2288_v15 = vld [vmem:[#allocation5 + $0x130] ss:$24 sps:$4 sm:$0xff]   ;;  %v2296_v18 = vld [vmem:[#allocation5 + $0xd4] ss:$24 sps:$4 sm:$0xff]  }
  0x7f   : > { %v2291_v17 = vld [vmem:[#allocation5 + $0x100] ss:$24 sps:$4 sm:$0xff]   ;;  %v2294_v19 = vld [vmem:[#allocation5 + $0xd0] ss:$24 sps:$4 sm:$0xff]   ;;  %v2299_v20 = vld [vmem:[#allocation5 + $0xa4] ss:$24 sps:$4 sm:$0xff]  }
  0x80   : > { %932 = vmatpush1.bf16.msra.mxu1 %v2224_v26  ;;  %v2297_v21 = vld [vmem:[#allocation5 + $0xa0] ss:$24 sps:$4 sm:$0xff]   ;;  %v2302_v22 = vld [vmem:[#allocation5 + $0x74] ss:$24 sps:$4 sm:$0xff]   ;;  %v2300_v23 = vld [vmem:[#allocation5 + $0x70] ss:$24 sps:$4 sm:$0xff]  }
  0x81   : > { %933 = vmatprep.subr.bf16.mxu1 %v2228_v27  ;;  %889 = vmatpush1.bf16.msra.mxu0 %v2227_v28  ;;  %v2305_v24 = vld [vmem:[#allocation5 + $0x44] ss:$24 sps:$4 sm:$0xff]   ;;  %v2303_v25 = vld [vmem:[#allocation5 + $0x40] ss:$24 sps:$4 sm:$0xff]   ;;  %v2308_v26 = vld [vmem:[#allocation5 + $0x14] ss:$24 sps:$4 sm:$0xff]  }
  0x82   : > { %890 = vmatprep.subr.bf16.mxu0 %v2231_v29  ;;  %v2306_v27 = vld [vmem:[#allocation5 + $0x10] ss:$24 sps:$4 sm:$0xff]   ;;  %v2311_v28 = vld [vmem:[#allocation5 + $0x2e4] ss:$24 sps:$4 sm:$0xff]   ;;  %v2309_v29 = vld [vmem:[#allocation5 + $0x2e0] ss:$24 sps:$4 sm:$0xff]  }
  0x83   : > { %s2603_s24 = smov 64   ;;  %s1890_s17 = sshll.u32 %s2781_s11, 5 }
  0x84   : > { %934 = vmatpush1.bf16.msra.mxu1 %v2230_v30  ;;  %v2314_v30 = vld [vmem:[#allocation5 + $0x2b4] ss:$24 sps:$4 sm:$0xff]   ;;  %s286_s28 = scalar_lea.vmem [#allocation10], %s1890_s17  ;;  %s2035_s6 = sshll.u32 %s2658_s22, 9 }
  0x85   : > { %935 = vmatprep.subr.bf16.mxu1 %v2234_v31  ;;  %891 = vmatpush1.bf16.msra.mxu0 %v2233_v32  ;;  %v2312_v31 = vld [vmem:[#allocation5 + $0x2b0] ss:$24 sps:$4 sm:$0xff]   ;;  %v2317_v32 = vld [vmem:[#allocation5 + $0x284] ss:$24 sps:$4 sm:$0xff]   ;;  %s1774_s30 = sshll.u32 %s286_s28, 4  ;;  %s2941_s23 = scalar_lea.hbm %s2989_s5, %s2035_s6  ;;  %s2936_s30 = int_to_ptr.vmem [resolvable:$true] %s1774_s30 }
  0x86   : > { %892 = vmatprep.subr.bf16.mxu0 %v2237_v33  ;;  %v2315_v33 = vld [vmem:[#allocation5 + $0x280] ss:$24 sps:$4 sm:$0xff]   ;;  %s1761_s29 = scalar_lea.sflag [#allocation4], %s2781_s11  ;;  %s2519_s7 = scalar_lea.vmem %s2936_s30, 512 }
  0x87   : > { %p2520_p12 = scmp.ne.s32.totalorder %s2936_s30, %s2519_s7  ;;  %p3009_p0 = scmp.ne.s32.totalorder %s3000_s9, 0 }
  0x88   : > { %936 = vmatpush2.bf16.msra.mxu1 %v2236_v34  ;;  %v2320_v34 = vld [vmem:[#allocation5 + $0x254] ss:$24 sps:$4 sm:$0xff]   ;;  %s2604_s22 = smov [#allocation10]  }
  0x89   : > { %937 = vmatprep.subr.bf16.mxu1 %v2240_v35  ;;  %893 = vmatpush2.bf16.msra.mxu0 %v2239_v36  ;;  %v2318_v35 = vld [vmem:[#allocation5 + $0x250] ss:$24 sps:$4 sm:$0xff]   ;;  %v2323_v36 = vld [vmem:[#allocation5 + $0x224] ss:$24 sps:$4 sm:$0xff]   ;;  %p2521_p5 = pnand %p2520_p12, %p3009_p0  ;;  %s2523_s13 = sshll.u32 %s2604_s22, 4  ;;  %s2524_s13 = int_to_ptr.vmem [resolvable:$false] %s2523_s13 }
  0x8a   : > { %894 = vmatprep.subr.bf16.mxu0 %v2243_v37  ;;  %v2321_v37 = vld [vmem:[#allocation5 + $0x220] ss:$24 sps:$4 sm:$0xff]   ;;  %s2525_s12 = scalar_lea.vmem %s2524_s13, 1024  ;;  %p2526_p1 = scmp.lt.s32.totalorder %s2936_s30, %s2524_s13 }
  0x8b   : > { %p2522_p10 = pneg %p2521_p5  ;;  %p2527_p2 = scmp.lt.s32.totalorder %s2525_s12, %s2519_s7 }
  0x8c   : > { %938 = vmatpush2.bf16.msra.mxu1 %v2242_v38  ;;  %v2326_v38 = vld [vmem:[#allocation5 + $0x1f4] ss:$24 sps:$4 sm:$0xff]  }
  0x8d   : > { %939 = vmatprep.subr.bf16.mxu1 %v2246_v39  ;;  %895 = vmatpush2.bf16.msra.mxu0 %v2245_v40  ;;  %v2324_v39 = vld [vmem:[#allocation5 + $0x1f0] ss:$24 sps:$4 sm:$0xff]   ;;  %v2329_v40 = vld [vmem:[#allocation5 + $0x1c4] ss:$24 sps:$4 sm:$0xff]   ;;  %p2528_p3 = por %p2527_p2, %p2526_p1 }
  0x8e   : > { %896 = vmatprep.subr.bf16.mxu0 %v2249_v41  ;;  %v2327_v41 = vld [vmem:[#allocation5 + $0x1c0] ss:$24 sps:$4 sm:$0xff]  }
  0x8f   : > { %p2529_p9 = pnand %p2528_p3, %p2522_p10 }
  0x90   : > { %940 = vmatpush2.bf16.msra.mxu1 %v2248_v42  ;;  %v2332_v42 = vld [vmem:[#allocation5 + $0x194] ss:$24 sps:$4 sm:$0xff]  }
  0x91   : > { %941 = vmatprep.subr.bf16.mxu1 %v2252_v44  ;;  %897 = vmatpush2.bf16.msra.mxu0 %v2251_v43  ;;  %v2330_v43 = vld [vmem:[#allocation5 + $0x190] ss:$24 sps:$4 sm:$0xff]  }
  0x92   : > { %898 = vmatprep.subr.bf16.mxu0 %v2255_v46 }
  0x94   : > { %942 = vmatpush2.bf16.msra.mxu1 %v2254_v45  ;;  %v2826_v45 = vld [vmem:[#allocation8] sm:$0xff] }
  0x95   : > { %943 = vmatprep.subr.bf16.mxu1 %v2258_v48  ;;  %899 = vmatpush2.bf16.msra.mxu0 %v2257_v47 }
  0x96   : > { %900 = vmatprep.subr.bf16.mxu0 %v2261_v50 }
  0x98   : > { %944 = vmatpush2.bf16.msra.mxu1 %v2260_v51 }
  0x99   : > { %945 = vmatprep.subr.bf16.mxu1 %v2264_v52  ;;  %901 = vmatpush2.bf16.msra.mxu0 %v2263_v53 }
  0x9a   : > { %902 = vmatprep.subr.bf16.mxu0 %v2267_v54 }
  0x9c   : > { %946 = vmatpush2.bf16.msra.mxu1 %v2266_v55 }
  0x9d   : > { %947 = vmatprep.subr.bf16.mxu1 %v2270_v56  ;;  %903 = vmatpush2.bf16.msra.mxu0 %v2269_v57 }
  0x9e   : > { %904 = vmatprep.subr.bf16.mxu0 %v2273_v58 }
  0xa0   : > { %948 = vmatpush2.bf16.msra.mxu1 %v2272_v59 }
  0xa1   : > { %949 = vmatprep.subr.bf16.mxu1 %v2276_v60  ;;  %905 = vmatpush2.bf16.msra.mxu0 %v2275_v61 }
  0xa2   : > { %906 = vmatprep.subr.bf16.mxu0 %v2279_v62 }
  0xa4   : > { %950 = vmatpush2.bf16.msra.mxu1 %v2278_v63 }
  0xa5   : > { %907 = vmatpush2.bf16.msra.mxu0 %v2283_v0  ;;  %2052 = vmatprep.subr.bf16.mxu1 %v2601_v2 }
  0xa6   : > { %962 = vmatprep.subr.bf16.mxu0 %v2287_v13 }
  0xa7   : > { %952 = vmatmul.mubr.bf16.vlgmr.msra.gmra.mxu1 %v2801_v1 }
  0xa8   : > { %909 = vmatmul.mubr.bf16.vlgmr.msra.gmra.mxu0 %v2801_v1  ;;  %2054 = vmatprep.mubr.msk.bf16.mxu1 %vm2602_vm0, %v2601_v2 }
  0xa9   : > { %994 = vmatprep.mubr.bf16.mxu0 %v2281_v49  ;;  %963 = vmatpush1.bf16.msra.mxu0 %v2285_v12  ;;  %v2829_v49 = vld [vmem:[#allocation8 + $0x8] sm:$0xff] }
  0xaa   : > { %964 = vmatprep.subr.bf16.mxu0 %v2290_v14 }
  0xad   : > { %965 = vmatpush1.bf16.msra.mxu0 %v2288_v15 }
  0xae   : > { %966 = vmatprep.subr.bf16.mxu0 %v2293_v16 }
  0xb1   : > { %967 = vmatpush1.bf16.msra.mxu0 %v2291_v17 }
  0xb2   : > { %968 = vmatprep.subr.bf16.mxu0 %v2296_v18 }
  0xb5   : > { %969 = vmatpush1.bf16.msra.mxu0 %v2294_v19 }
  0xb6   : > { %970 = vmatprep.subr.bf16.mxu0 %v2299_v20 }
  0xb9   : > { %971 = vmatpush1.bf16.msra.mxu0 %v2297_v21 }
  0xba   : > { %972 = vmatprep.subr.bf16.mxu0 %v2302_v22 }
  0xbd   : > { %973 = vmatpush1.bf16.msra.mxu0 %v2300_v23 }
  0xbe   : > { %974 = vmatprep.subr.bf16.mxu0 %v2305_v24 }
  0xc1   : > { %975 = vmatpush1.bf16.msra.mxu0 %v2303_v25 }
  0xc2   : > { %976 = vmatprep.subr.bf16.mxu0 %v2308_v26 }
  0xc5   : > { %977 = vmatpush1.bf16.msra.mxu0 %v2306_v27 }
  0xc6   : > { %978 = vmatprep.subr.bf16.mxu0 %v2311_v28 }
  0xc9   : > { %979 = vmatpush2.bf16.msra.mxu0 %v2309_v29 }
  0xca   : > { %980 = vmatprep.subr.bf16.mxu0 %v2314_v30 }
  0xcd   : > { %981 = vmatpush2.bf16.msra.mxu0 %v2312_v31 }
  0xce   : > { %982 = vmatprep.subr.bf16.mxu0 %v2317_v32 }
  0xd1   : > { %983 = vmatpush2.bf16.msra.mxu0 %v2315_v33 }
  0xd2   : > { %984 = vmatprep.subr.bf16.mxu0 %v2320_v34 }
  0xd5   : > { %985 = vmatpush2.bf16.msra.mxu0 %v2318_v35 }
  0xd6   : > { %986 = vmatprep.subr.bf16.mxu0 %v2323_v36 }
  0xd9   : > { %987 = vmatpush2.bf16.msra.mxu0 %v2321_v37 }
  0xda   : > { %988 = vmatprep.subr.bf16.mxu0 %v2326_v38 }
  0xdd   : > { %989 = vmatpush2.bf16.msra.mxu0 %v2324_v39 }
  0xde   : > { %990 = vmatprep.subr.bf16.mxu0 %v2329_v40 }
  0xe1   : > { %991 = vmatpush2.bf16.msra.mxu0 %v2327_v41 }
  0xe2   : > { %992 = vmatprep.subr.bf16.mxu0 %v2332_v42 }
  0xe5   : > { %993 = vmatpush2.bf16.msra.mxu0 %v2330_v43 }
  0xe8   : > { %995 = vmatmul.mubr.bf16.vlgmr.msra.gmra.mxu0 %v2801_v1 }
 0x167   : > { %v953_v3 = vpop.f32.mrf.mxu1 }
 0x168   : > { %v910_v5 = vpop.f32.mrf.mxu0 }
 0x169   : > { %v2808_v4 = vpop.f32.mrf.mxu1 }
 0x16a   : > { %v2814_v9 = vpop.f32.mrf.mxu0 }
 0x16b   : > { %v957_v6 = vpop.f32.mrf.mxu1 }
 0x16c   : > { %v2810_v7 = vpack.c.bf16 %v957_v6, %v953_v3  ;;  %v914_v10 = vpop.f32.mrf.mxu0 }
 0x16d   : > { %v2817_v11 = vpack.c.bf16 %v914_v10, %v910_v5  ;;  %v2824_v44 = vpop.f32.mrf.mxu1 }
 0x16e   : > { %v1018_v8 = vsel %vm1013_vm1, %v2810_v7, 0  ;;  %v916_v1 = vpop.f32.mrf.mxu0 }
 0x16f   : > { %2053 = vmatpush3.bf16.xpose.msra.mxu1 %v1018_v8  ;;  %v1006_v42 = vpack.c.bf16 %v916_v1, %v2814_v9 }
 0x170   : > { %2058 = vmatprep.subr.bf16.mxu1 %v2601_v2 }
 0x176   : > { %2055 = vmatmul.mubr.msk.bf16.vlgmr.msra.gmra.mxu1 %vm1013_vm1, %v2817_v11 }
 0x177   : > { %2060 = vmatprep.mubr.msk.bf16.mxu1 %vm2602_vm0, %v2601_v2 }
 0x1a8   : > { %v996_v3 = vpop.f32.mrf.mxu0 }
 0x1aa   : > { %v2838_v5 = vpop.f32.mrf.mxu0 }
 0x1ac   : > { %v1000_v6 = vpop.f32.mrf.mxu0 }
 0x236   : > { %v1054_v46 = vpop.f32.mrf.mxu1 }
 0x237   : > { %v1055_v47 = vadd.f32 %v1054_v46, %v2826_v45 }
 0x238   : > { %v2056_v48 = vpop.f32.mrf.mxu1 }
 0x239   : > { %v1062_v50 = vsel %vm1061_vm2, %v1055_v47, -inf }
 0x23a   : > { %1063 = vmax.xlane.f32.xlu0 %v1062_v50  ;;  %v1057_v51 = vpop.f32.mrf.mxu1 }
 0x23b   : > { %v1058_v52 = vadd.f32 %v1057_v51, %v2829_v49  ;;  %v1008_v51 = vpack.c.bf16 %v2824_v44, %v2808_v4 }
 0x23c   : > { %v2057_v53 = vpop.f32.mrf.mxu1 }
 0x23d   : > { %v1065_v54 = vsel %vm1061_vm2, %v1058_v52, -inf  ;;  %v1259_v9 = vsel %vm1013_vm1, %v1008_v51, 0 }
 0x23e   : > { %1066 = vmax.xlane.f32.xlu0 %v1065_v54 }
 0x254   : > { %1134 = vrot.lane.b32.xlu0 %v2810_v7, %s2603_s24  ;;  %v1009_v7 = vpack.c.bf16 %v1000_v6, %v996_v3 }
 0x256   : > { %2059 = vmatpush3.bf16.msra.mxu1 %v1009_v7 }
 0x257   : > { %2064 = vmatprep.subr.bf16.mxu1 %v2601_v2 }
 0x2c3   : > { %v1064_v55 = vpop.xlane.xlu0 %1063 }
 0x2c4   : > { %v1068_v56 = vsub.f32 %v1055_v47, %v1064_v55  ;;  %v1002_v55 = vpop.f32.mrf.mxu0 }
 0x2c6   : > { %v1070_v57 = vmul.f32 1.442695, %v1068_v56  ;;  %v2875_v56 = vpack.c.bf16 %v1002_v55, %v2838_v5 }
 0x2c7   : > { %v1067_v58 = vpop.xlane.xlu0 %1066 }
 0x2c8   : > { %2381 = vpow2.f32 %v1070_v57  ;;  %v1069_v59 = vsub.f32 %v1058_v52, %v1067_v58 }
 0x2ca   : > { %v1072_v60 = vmul.f32 1.442695, %v1069_v59 }
 0x2cb   : > { %v1135_v16 = vpop.permute.xlu0 %1134 }
 0x2cc   : > { %2383 = vpow2.f32 %v1072_v60  ;;  %v1140_v18 = vsel %vm1013_vm1, %v1135_v16, 0 }
 0x2d5   : > { %v2382_v61 = vpop.eup %2381 }
 0x2d6   : > { %v1074_v62 = vsel %vm1061_vm2, %v2382_v61, 0.0 }
 0x2d7   : > { %1075 = vadd.xlane.f32.xlu1 %v1074_v62 }
 0x2d9   : > { %v2384_v63 = vpop.eup %2383 }
 0x2da   : > { %v1077_v0 = vsel %vm1061_vm2, %v2384_v63, 0.0 }
 0x2db   : > { %1078 = vadd.xlane.f32.xlu1 %v1077_v0 }
 0x2ec   : > { %1131 = vrot.lane.b32.xlu1 %v2817_v11, %s2603_s24 }
 0x360   : > { %v1076_v8 = vpop.xlane.xlu1 %1075 }
 0x361   : > { %2385 = vrcp.f32 %v1076_v8 }
 0x364   : > { %v1079_v10 = vpop.xlane.xlu1 %1078 }
 0x365   : > { %2387 = vrcp.f32 %v1079_v10 }
 0x368   : > { %v1132_v11 = vpop.permute.xlu1 %1131 }
 0x36e   : > { %v2386_v12 = vpop.eup %2385 }
 0x36f   : > { %v1082_v14 = vmul.f32 %v2386_v12, %v2382_v61 }
 0x372   : > { %v2388_v13 = vpop.eup %2387 }
 0x373   : > { %v1083_v15 = vmul.f32 %v2388_v13, %v2384_v63 }
 0x375   : > { %v1084_v17 = vpack.c.bf16 %v1083_v15, %v1082_v14 }
 0x377   : > { %2061 = vmatmul.mubr.msk.bf16.vlgmr.msra.gmra.mxu1 %vm1061_vm2, %v1084_v17 }
 0x378   : > { %2065 = vmatpush3.bf16.xpose.msra.mxu1 %v1140_v18  ;;  %2066 = vmatprep.mubr.msk.bf16.mxu1 %vm2602_vm0, %v2601_v2 }
 0x379   : > { %2070 = vmatprep.subr.bf16.mxu1 %v2601_v2 }
 0x37f   : > { %2067 = vmatmul.mubr.msk.bf16.vlgmr.msra.gmra.mxu1 %vm1013_vm1, %v1132_v11 }
 0x380   : > { %2072 = vmatprep.mubr.msk.bf16.mxu1 %vm2602_vm0, %v2601_v2 }
 0x437   : > { %v2851_v19 = vpop.f32.mrf.mxu1 }
 0x439   : > { %v2062_v20 = vpop.f32.mrf.mxu1 }
 0x43b   : > { %v2853_v21 = vpop.f32.mrf.mxu1 }
 0x43c   : > { %v1129_v22 = vpack.c.bf16 %v2853_v21, %v2851_v19 }
 0x43d   : > { %v2063_v23 = vpop.f32.mrf.mxu1 }
 0x43f   : > { %v1176_v24 = vpop.f32.mrf.mxu1 }
 0x440   : > { %v1177_v25 = vadd.f32 %v1176_v24, %v2826_v45 }
 0x441   : > { %v2068_v26 = vpop.f32.mrf.mxu1 }
 0x442   : > { %v1183_v27 = vsel %vm1061_vm2, %v1177_v25, -inf }
 0x443   : > { %1184 = vmax.xlane.f32.xlu1 %v1183_v27  ;;  %v1179_v28 = vpop.f32.mrf.mxu1 }
 0x444   : > { %v1180_v29 = vadd.f32 %v1179_v28, %v2829_v49 }
 0x445   : > { %v2069_v30 = vpop.f32.mrf.mxu1 }
 0x446   : > { %v1186_v31 = vsel %vm1061_vm2, %v1180_v29, -inf }
 0x447   : > { %1187 = vmax.xlane.f32.xlu0 %v1186_v31 }
 0x4cc   : > { %v1185_v32 = vpop.xlane.xlu1 %1184 }
 0x4cd   : > { %v1189_v33 = vsub.f32 %v1177_v25, %v1185_v32 }
 0x4cf   : > { %v1191_v34 = vmul.f32 1.442695, %v1189_v33 }
 0x4d0   : > { %v1188_v35 = vpop.xlane.xlu0 %1187 }
 0x4d1   : > { %2389 = vpow2.f32 %v1191_v34  ;;  %v1190_v36 = vsub.f32 %v1180_v29, %v1188_v35 }
 0x4d3   : > { %v1193_v37 = vmul.f32 1.442695, %v1190_v36 }
 0x4d5   : > { %2391 = vpow2.f32 %v1193_v37 }
 0x4de   : > { %v2390_v38 = vpop.eup %2389 }
 0x4df   : > { %v1195_v39 = vsel %vm1061_vm2, %v2390_v38, 0.0 }
 0x4e0   : > { %1196 = vadd.xlane.f32.xlu0 %v1195_v39 }
 0x4e2   : > { %v2392_v40 = vpop.eup %2391 }
 0x4e3   : > { %v1198_v41 = vsel %vm1061_vm2, %v2392_v40, 0.0 }
 0x4e4   : > { %1199 = vadd.xlane.f32.xlu1 %v1198_v41 }
 0x4f6   : > { %1207 = vrot.lane.b32.xlu0 %v1009_v7, %s2603_s24 }
 0x4fa   : > { %1371 = vrot.lane.b32.xlu0 %v1006_v42, %s2603_s24 }
 0x569   : > { %v1197_v43 = vpop.xlane.xlu0 %1196 }
 0x56a   : > { %2393 = vrcp.f32 %v1197_v43 }
 0x56d   : > { %v1200_v46 = vpop.xlane.xlu1 %1199  ;;  %v1208_v47 = vpop.permute.xlu0 %1207 }
 0x56e   : > { %2395 = vrcp.f32 %v1200_v46  ;;  %2071 = vmatpush3.bf16.msra.mxu1 %v1208_v47 }
 0x56f   : > { %2076 = vmatprep.subr.bf16.mxu1 %v2601_v2 }
 0x571   : > { %v1372_v29 = vpop.permute.xlu0 %1371 }
 0x577   : > { %v2394_v48 = vpop.eup %2393 }
 0x578   : > { %v1203_v52 = vmul.f32 %v2394_v48, %v2390_v38 }
 0x57b   : > { %v2396_v50 = vpop.eup %2395 }
 0x57c   : > { %v1204_v53 = vmul.f32 %v2396_v50, %v2392_v40 }
 0x57e   : > { %v1205_v54 = vpack.c.bf16 %v1204_v53, %v1203_v52 }
 0x580   : > { %2073 = vmatmul.mubr.msk.bf16.vlgmr.msra.gmra.mxu1 %vm1061_vm2, %v1205_v54 }
 0x581   : > { %2077 = vmatpush3.bf16.xpose.msra.mxu1 %v1259_v9  ;;  %2078 = vmatprep.mubr.msk.bf16.mxu1 %vm2602_vm0, %v2601_v2 }
 0x582   : > { %2082 = vmatprep.subr.bf16.mxu1 %v2601_v2 }
 0x588   : > { %2079 = vmatmul.mubr.msk.bf16.vlgmr.msra.gmra.mxu1 %vm1013_vm1, %v1006_v42 }
 0x589   : > { %2083 = vmatpush3.bf16.msra.mxu1 %v2875_v56  ;;  %2084 = vmatprep.mubr.msk.bf16.mxu1 %vm2602_vm0, %v2601_v2 }
 0x58a   : > { %2088 = vmatprep.subr.bf16.mxu1 %v2601_v2 }
 0x640   : > { %v2882_v4 = vpop.f32.mrf.mxu1 }
 0x642   : > { %v2074_v44 = vpop.f32.mrf.mxu1 }
 0x644   : > { %v2884_v57 = vpop.f32.mrf.mxu1 }
 0x645   : > { %v1254_v58 = vpack.c.bf16 %v2884_v57, %v2882_v4  ;;  %v1541_v4 = vld [vmem:[%s2987_s3] sm:$0x3] }
 0x646   : > { %v2075_v59 = vpop.f32.mrf.mxu1 }
 0x648   : > { %v1295_v60 = vpop.f32.mrf.mxu1 }
 0x649   : > { %v1296_v61 = vadd.f32 %v1295_v60, %v2826_v45 }
 0x64a   : > { %v2080_v62 = vpop.f32.mrf.mxu1 }
 0x64b   : > { %v1302_v63 = vsel %vm1061_vm2, %v1296_v61, -inf  ;;  %v2333_v62 = vld [vmem:[#allocation7 + $0x70] ss:$8 sps:$4 sm:$0xff]  }
 0x64c   : > { %1303 = vmax.xlane.f32.xlu1 %v1302_v63  ;;  %v1298_v0 = vpop.f32.mrf.mxu1  ;;  %v2335_v63 = vld [vmem:[#allocation7 + $0x74] ss:$8 sps:$4 sm:$0xff]  }
 0x64d   : > { %v1299_v1 = vadd.f32 %v1298_v0, %v2829_v49  ;;  %v2338_v0 = vld [vmem:[#allocation7 + $0x64] ss:$8 sps:$4 sm:$0xff]   ;;  %1713 = vmatprep.subr.bf16.mxu0 %v2335_v63 }
 0x64e   : > { %v2081_v3 = vpop.f32.mrf.mxu1  ;;  %1714 = vmatpush1.bf16.msra.mxu0 %v2333_v62 }
 0x64f   : > { %v1305_v5 = vsel %vm1061_vm2, %v1299_v1, -inf  ;;  %1715 = vmatprep.subr.bf16.mxu0 %v2338_v0  ;;  %v2339_v3 = vld [vmem:[#allocation7 + $0x50] ss:$8 sps:$4 sm:$0xff]  }
 0x650   : > { %1306 = vmax.xlane.f32.xlu1 %v1305_v5  ;;  %v2344_v5 = vld [vmem:[#allocation7 + $0x44] ss:$8 sps:$4 sm:$0xff]  }
 0x6d5   : > { %v1304_v6 = vpop.xlane.xlu1 %1303 }
 0x6d6   : > { %v1308_v7 = vsub.f32 %v1296_v61, %v1304_v6  ;;  %v2342_v6 = vld [vmem:[#allocation7 + $0x40] ss:$8 sps:$4 sm:$0xff]  }
 0x6d8   : > { %v1310_v8 = vmul.f32 1.442695, %v1308_v7  ;;  %v2347_v7 = vld [vmem:[#allocation7 + $0x34] ss:$8 sps:$4 sm:$0xff]  }
 0x6d9   : > { %v1307_v10 = vpop.xlane.xlu1 %1306 }
 0x6da   : > { %2397 = vpow2.f32 %v1310_v8  ;;  %v1309_v12 = vsub.f32 %v1299_v1, %v1307_v10  ;;  %v2336_v1 = vld [vmem:[#allocation7 + $0x60] ss:$8 sps:$4 sm:$0xff]   ;;  %v2345_v8 = vld [vmem:[#allocation7 + $0x30] ss:$8 sps:$4 sm:$0xff]   ;;  %v2350_v10 = vld [vmem:[#allocation7 + $0x24] ss:$8 sps:$4 sm:$0xff]  }
 0x6db   : > { %1716 = vmatpush1.bf16.msra.mxu0 %v2336_v1 }
 0x6dc   : > { %v1312_v13 = vmul.f32 1.442695, %v1309_v12  ;;  %v2348_v12 = vld [vmem:[#allocation7 + $0x20] ss:$8 sps:$4 sm:$0xff]  }
 0x6de   : > { %2399 = vpow2.f32 %v1312_v13  ;;  %v2353_v13 = vld [vmem:[#allocation7 + $0x14] ss:$8 sps:$4 sm:$0xff]  }
 0x6e7   : > { %v2398_v14 = vpop.eup %2397 }
 0x6e8   : > { %v1314_v15 = vsel %vm1061_vm2, %v2398_v14, 0.0 }
 0x6e9   : > { %1315 = vadd.xlane.f32.xlu1 %v1314_v15  ;;  %v2356_v15 = vld [vmem:[#allocation7 + $0x4] ss:$8 sps:$4 sm:$0xff]  }
 0x6eb   : > { %v2400_v16 = vpop.eup %2399 }
 0x6ec   : > { %v1317_v17 = vsel %vm1061_vm2, %v2400_v16, 0.0 }
 0x6ed   : > { %1318 = vadd.xlane.f32.xlu1 %v1317_v17  ;;  %v2359_v17 = vld [vmem:[#allocation7 + $0xf4] ss:$8 sps:$4 sm:$0xff]  }
 0x6fe   : > { %1374 = vrot.lane.b32.xlu1 %v1008_v51, %s2603_s24 }
 0x772   : > { %v1316_v18 = vpop.xlane.xlu1 %1315 }
 0x773   : > { %2401 = vrcp.f32 %v1316_v18  ;;  %v2357_v18 = vld [vmem:[#allocation7 + $0xf0] ss:$8 sps:$4 sm:$0xff]  }
 0x776   : > { %v1319_v11 = vpop.xlane.xlu1 %1318 }
 0x777   : > { %2403 = vrcp.f32 %v1319_v11  ;;  %v2362_v11 = vld [vmem:[#allocation7 + $0xe4] ss:$8 sps:$4 sm:$0xff]  }
 0x77a   : > { %v1375_v26 = vpop.permute.xlu1 %1374 }
 0x77b   : > { %v1380_v28 = vsel %vm1013_vm1, %v1375_v26, 0  ;;  %v2366_v26 = vld [vmem:[#allocation7 + $0xc0] ss:$8 sps:$4 sm:$0xff]  }
 0x780   : > { %v2402_v20 = vpop.eup %2401 }
 0x781   : > { %v1322_v24 = vmul.f32 %v2402_v20, %v2398_v14  ;;  %v2351_v14 = vld [vmem:[#allocation7 + $0x10] ss:$8 sps:$4 sm:$0xff]   ;;  %v2360_v20 = vld [vmem:[#allocation7 + $0xe0] ss:$8 sps:$4 sm:$0xff]  }
 0x784   : > { %v2404_v23 = vpop.eup %2403 }
 0x785   : > { %v1323_v25 = vmul.f32 %v2404_v23, %v2400_v16  ;;  %v2354_v16 = vld [vmem:[#allocation7] ss:$8 sps:$4 sm:$0xff]   ;;  %v2365_v23 = vld [vmem:[#allocation7 + $0xd4] ss:$8 sps:$4 sm:$0xff]  }
 0x787   : > { %v1324_v27 = vpack.c.bf16 %v1323_v25, %v1322_v24  ;;  %v2363_v24 = vld [vmem:[#allocation7 + $0xd0] ss:$8 sps:$4 sm:$0xff]   ;;  %v2368_v25 = vld [vmem:[#allocation7 + $0xc4] ss:$8 sps:$4 sm:$0xff]  }
 0x789   : > { %2085 = vmatmul.mubr.msk.bf16.vlgmr.msra.gmra.mxu1 %vm1061_vm2, %v1324_v27  ;;  %v2371_v27 = vld [vmem:[#allocation7 + $0xb4] ss:$8 sps:$4 sm:$0xff]  }
 0x78a   : > { %2089 = vmatpush3.bf16.xpose.msra.mxu1 %v1380_v28  ;;  %2090 = vmatprep.mubr.msk.bf16.mxu1 %vm2602_vm0, %v2601_v2  ;;  %v2369_v28 = vld [vmem:[#allocation7 + $0xb0] ss:$8 sps:$4 sm:$0xff]  }
 0x78b   : > { %2094 = vmatprep.subr.bf16.mxu1 %v2601_v2 }
 0x791   : > { %2091 = vmatmul.mubr.msk.bf16.vlgmr.msra.gmra.mxu1 %vm1013_vm1, %v1372_v29  ;;  %v2374_v29 = vld [vmem:[#allocation7 + $0xa4] ss:$8 sps:$4 sm:$0xff]  }
 0x792   : > { %2096 = vmatprep.mubr.msk.bf16.mxu1 %vm2602_vm0, %v2601_v2 }
 0x849   : > { %v2903_v30 = vpop.f32.mrf.mxu1 }
 0x84b   : > { %v2086_v31 = vpop.f32.mrf.mxu1 }
 0x84c   : > { %v2372_v31 = vld [vmem:[#allocation7 + $0xa0] ss:$8 sps:$4 sm:$0xff]  }
 0x84d   : > { %v2905_v32 = vpop.f32.mrf.mxu1 }
 0x84e   : > { %v1369_v33 = vpack.c.bf16 %v2905_v32, %v2903_v30 }
 0x84f   : > { %v2087_v34 = vpop.f32.mrf.mxu1 }
 0x850   : > { %v2377_v34 = vld [vmem:[#allocation7 + $0x94] ss:$8 sps:$4 sm:$0xff]  }
 0x851   : > { %v1416_v35 = vpop.f32.mrf.mxu1 }
 0x852   : > { %v1417_v36 = vadd.f32 %v1416_v35, %v2826_v45  ;;  %v2375_v35 = vld [vmem:[#allocation7 + $0x90] ss:$8 sps:$4 sm:$0xff]  }
 0x853   : > { %v2092_v37 = vpop.f32.mrf.mxu1 }
 0x854   : > { %v1423_v38 = vsel %vm1061_vm2, %v1417_v36, -inf  ;;  %v2380_v37 = vld [vmem:[#allocation7 + $0x84] ss:$8 sps:$4 sm:$0xff]  }
 0x855   : > { %1424 = vmax.xlane.f32.xlu0 %v1423_v38  ;;  %v1419_v39 = vpop.f32.mrf.mxu1 }
 0x856   : > { %v1420_v40 = vadd.f32 %v1419_v39, %v2829_v49 }
 0x857   : > { %v2093_v2 = vpop.f32.mrf.mxu1 }
 0x858   : > { %v1426_v41 = vsel %vm1061_vm2, %v1420_v40, -inf }
 0x859   : > { %1427 = vmax.xlane.f32.xlu1 %v1426_v41 }
 0x8de   : > { %v1425_v42 = vpop.xlane.xlu0 %1424 }
 0x8df   : > { %v1429_v43 = vsub.f32 %v1417_v36, %v1425_v42  ;;  %v2378_v36 = vld [vmem:[#allocation7 + $0x80] ss:$8 sps:$4 sm:$0xff]  }
 0x8e1   : > { %v1431_v46 = vmul.f32 1.442695, %v1429_v43 }
 0x8e2   : > { %v1428_v47 = vpop.xlane.xlu1 %1427 }
 0x8e3   : > { %2405 = vpow2.f32 %v1431_v46  ;;  %v1430_v48 = vsub.f32 %v1420_v40, %v1428_v47 }
 0x8e5   : > { %v1433_v50 = vmul.f32 1.442695, %v1430_v48  ;;  %v1543_v48 = vlaneseq }
 0x8e7   : > { %2407 = vpow2.f32 %v1433_v50  ;;  %v1544_v50 = vshrl.u32 %v1543_v48, 7 }
 0x8e9   : > { %v1549_v57 = vsub.s32 1, %v1544_v50 }
 0x8eb   : > { %v1550_v30 = vrot.slane %v1541_v4, %v1549_v57 }
 0x8f0   : > { %v2406_v45 = vpop.eup %2405 }
 0x8f1   : > { %v1435_v51 = vsel %vm1061_vm2, %v2406_v45, 0.0 }
 0x8f2   : > { %1436 = vadd.xlane.f32.xlu0 %v1435_v51 }
 0x8f4   : > { %v2408_v52 = vpop.eup %2407 }
 0x8f5   : > { %v1438_v53 = vsel %vm1061_vm2, %v2408_v52, 0.0 }
 0x8f6   : > { %1439 = vadd.xlane.f32.xlu0 %v1438_v53 }
 0x90c   : > { %1447 = vrot.lane.b32.xlu0 %v2875_v56, %s2603_s24  ;;  %v2341_v56 = vld [vmem:[#allocation7 + $0x54] ss:$8 sps:$4 sm:$0xff]  }
 0x90d   : > { %1717 = vmatprep.subr.bf16.mxu0 %v2341_v56 }
 0x90e   : > { %1718 = vmatpush1.bf16.msra.mxu0 %v2339_v3 }
 0x90f   : > { %1719 = vmatprep.subr.bf16.mxu0 %v2344_v5 }
 0x912   : > { %1720 = vmatpush1.bf16.msra.mxu0 %v2342_v6 }
 0x913   : > { %1721 = vmatprep.subr.bf16.mxu0 %v2347_v7 }
 0x916   : > { %1722 = vmatpush1.bf16.msra.mxu0 %v2345_v8 }
 0x917   : > { %1723 = vmatprep.subr.bf16.mxu0 %v2350_v10 }
 0x91a   : > { %1724 = vmatpush1.bf16.msra.mxu0 %v2348_v12 }
 0x91b   : > { %1725 = vmatprep.subr.bf16.mxu0 %v2353_v13 }
 0x91e   : > { %1726 = vmatpush1.bf16.msra.mxu0 %v2351_v14 }
 0x91f   : > { %1727 = vmatprep.subr.bf16.mxu0 %v2356_v15 }
 0x922   : > { %1728 = vmatpush1.bf16.msra.mxu0 %v2354_v16 }
 0x923   : > { %1729 = vmatprep.subr.bf16.mxu0 %v2359_v17 }
 0x926   : > { %1730 = vmatpush2.bf16.msra.mxu0 %v2357_v18 }
 0x927   : > { %1731 = vmatprep.subr.bf16.mxu0 %v2362_v11 }
 0x92a   : > { %1732 = vmatpush2.bf16.msra.mxu0 %v2360_v20 }
 0x92b   : > { %1733 = vmatprep.subr.bf16.mxu0 %v2365_v23 }
 0x92e   : > { %1734 = vmatpush2.bf16.msra.mxu0 %v2363_v24 }
 0x92f   : > { %1735 = vmatprep.subr.bf16.mxu0 %v2368_v25 }
 0x932   : > { %1736 = vmatpush2.bf16.msra.mxu0 %v2366_v26 }
 0x933   : > { %1737 = vmatprep.subr.bf16.mxu0 %v2371_v27 }
 0x936   : > { %1738 = vmatpush2.bf16.msra.mxu0 %v2369_v28 }
 0x937   : > { %1739 = vmatprep.subr.bf16.mxu0 %v2374_v29 }
 0x93a   : > { %1740 = vmatpush2.bf16.msra.mxu0 %v2372_v31 }
 0x93b   : > { %1741 = vmatprep.subr.bf16.mxu0 %v2377_v34 }
 0x93e   : > { %1742 = vmatpush2.bf16.msra.mxu0 %v2375_v35 }
 0x93f   : > { %1743 = vmatprep.subr.bf16.mxu0 %v2380_v37 }
 0x942   : > { %1744 = vmatpush2.bf16.msra.mxu0 %v2378_v36 }
 0x97b   : > { %v1437_v49 = vpop.xlane.xlu0 %1436 }
 0x97c   : > { %2409 = vrcp.f32 %v1437_v49 }
 0x97f   : > { %v1440_v54 = vpop.xlane.xlu0 %1439 }
 0x980   : > { %2411 = vrcp.f32 %v1440_v54 }
 0x983   : > { %v1448_v9 = vpop.permute.xlu0 %1447 }
 0x984   : > { %2095 = vmatpush3.bf16.msra.mxu1 %v1448_v9 }
 0x989   : > { %v2410_v55 = vpop.eup %2409 }
 0x98a   : > { %v1443_v59 = vmul.f32 %v2410_v55, %v2406_v45  ;;  %v1545_v45 = vsub.s32 0, %v1544_v50 }
 0x98d   : > { %v2412_v44 = vpop.eup %2411 }
 0x98e   : > { %v1444_v60 = vmul.f32 %v2412_v44, %v2408_v52 }
 0x990   : > { %v1445_v61 = vpack.c.bf16 %v1444_v60, %v1443_v59 }
 0x992   : > { %2097 = vmatmul.mubr.msk.bf16.vlgmr.msra.gmra.mxu1 %vm1061_vm2, %v1445_v61 }
 0xa52   : > { %v1487_v38 = vpop.f32.mrf.mxu1 }
 0xa54   : > { %v2098_v39 = vpop.f32.mrf.mxu1 }
 0xa56   : > { %v1490_v40 = vpop.f32.mrf.mxu1 }
 0xa57   : > { %v1494_v2 = vpack.c.bf16 %v1490_v40, %v1487_v38 }
 0xa58   : > { %v2099_v41 = vpop.f32.mrf.mxu1 }
 0xa59   : > { %1499 = vrot.lane.b32.xlu1 %v1494_v2, %s2603_s24 }
 0xa5d   : > { %1496 = vrot.lane.b32.xlu1 %v1254_v58, %s2603_s24  ;;  %v1546_v58 = vrot.slane %v1541_v4, %v1545_v45 }
 0xacb   : > { %v1500_v42 = vpop.permute.xlu1 %1499 }
 0xacc   : > { %v1507_v43 = vsel %vm1013_vm1, %v1369_v33, %v1500_v42 }
 0xacd   : > { %1745 = vmatprep.mubr.bf16.mxu0 %v1507_v43 }
 0xacf   : > { %v1497_v46 = vpop.permute.xlu1 %1496 }
 0xad0   : > { %v1503_v47 = vsel %vm1013_vm1, %v1129_v22, %v1497_v46 }
 0xad1   : > { %1746 = vmatmul.mubr.bf16.vlgmr.msra.gmra.mxu0 %v1503_v47 }
 0xb91   : > { %v1747_v32 = vpop.f32.mrf.mxu0 }
 0xb92   : > { %v1748_v33 = vadd.f32 %v1747_v32, %v1546_v58 }
 0xb93   : > { %v1749_v19 = vpop.f32.mrf.mxu0 }
 0xb94   : > { %1756 = vst [vmem:[%s286_s28] sm:$0xff] %v1748_v33  ;;  %v1750_v21 = vadd.f32 %v1749_v19, %v1550_v30 }
 0xb95   : > { %v1751_v22 = vpop.f32.mrf.mxu0 }
 0xb96   : > { %1757 = vst [vmem:[%s286_s28 + $0x8] sm:$0xff] %v1750_v21  ;;  %v1752_v51 = vadd.f32 %v1751_v22, %v1546_v58 }
 0xb97   : > { %v1753_v52 = vpop.f32.mrf.mxu0 }
 0xb98   : > { %1758 = vst [vmem:[%s286_s28 + $0x10] sm:$0xff] %v1752_v51  ;;  %v1754_v53 = vadd.f32 %v1753_v52, %v1550_v30 }
 0xb9a   : > { %1759 = vst [vmem:[%s286_s28 + $0x18] sm:$0xff] %v1754_v53 }
 0xb9b   : > { %2532 = shalt.err (!%p2529_p9)
}
 0xb9c   : > { %s2533_s15 = scalar_lea.hbm %s2941_s23, 512  ;;  %s2537_s14 = scalar_lea.hbm %s2989_s5, 1024 }
 0xb9d   : > { %p2534_p7 = scmp.ne.s32.totalorder %s2941_s23, %s2533_s15  ;;  %p2538_p6 = scmp.lt.s32.totalorder %s2941_s23, %s2989_s5 }
 0xb9e   : > { %p2539_p11 = scmp.lt.s32.totalorder %s2537_s14, %s2533_s15 }
 0xb9f   : > { %p2535_p4 = pnand %p2534_p7, %p3009_p0 }
 0xba0   : > { %p2540_p13 = por %p2539_p11, %p2538_p6 }
 0xba1   : > { %p2536_p8 = pneg %p2535_p4 }
 0xba3   : > { %p2541_p12 = pnand %p2540_p13, %p2536_p8 }
 0xba5   : > { %2544 = shalt.err (!%p2541_p12)
}
 0xba6   : > { %s2605_s6 = smov 256   ;;  %s2606_s16 = smov 16  }
 0xba7   : > { %2114 = dma.vmem_to_hbm [thread:$0]  (%p3009_p0), %s2936_s30, 512, %s2941_s23, %s1761_s29, %s2605_s6, %s2605_s6, %s2606_s16  }
 0xba8 PF: > { %s1789_s10 = sand.u32 1, %s2579_s18   ;;  %p3010_p5 = scmp.ne.s32.totalorder %s2996_s25, 0 }
 0xba9   : > { %p3011_p10 = scmp.ge.s32.totalorder %s2591_s21, 2  ;;  %s1790_s7 = scalar_lea.sflag [#allocation4], %s1789_s10 }
 0xbab   : > { %p2131_p1 = pnand %p3011_p10, %p3010_p5 }
 0xbad   : > { %p2132_p2 = pneg %p2131_p1 }
 0xbaf   : > { %2574 = dma.done.wait (%p2132_p2), %s1790_s7, 512  }
 0xbb0   : > { %2576 = vsyncadd (%p2132_p2), %s1790_s7, 4294966784  ;;  %p20_p3 = scmp.ge.s32.totalorder %s2712_s27, 4   ;;  %s3012_s18 = smov %s2583_s19 }
 0xbb1   : > { %s3013_s19 = smov %s2587_s20  ;;  %s3014_s20 = smov %s2733_s8 }
 0xbb2   : > { %s3015_s21 = smov %s2712_s27  ;;  %22 = sbr.rel (!%p20_p3) target bundleno = 7 (0x7), region = 97 }
 0xbb7   :  { %1795 = vsyncpa [#allocation3], 1 }
 0xbb8   :  { %1797 = vsyncpa [#allocation3 + $0x1], 1 }
 0xbb9   :  { %1798 = vsyncpa [#allocation6], 1 }
 0xbba   :  { %1799 = vsyncpa [#allocation9], 1 }
 0xbbb   :  { %1800 = vsyncpa [#allocation4], 1 }
 0xbbc   :  { %1802 = vsyncpa [#allocation4 + $0x1], 1 }

</bundles_post_ra>
